<compile_context>
chip_gen: v7x
topology: tpu7x:2x2x1
jax: 0.10.0
libtpu: 0.0.40
codegen_flags: <defaults>
</compile_context>

<pallas_src>
import functools
import math

import jax
import jax.numpy as jnp
from jax.experimental import pallas as pl
from jax.experimental.pallas import tpu as pltpu

# ---- miniature BERT config (small shapes, same forward semantics) -----------
VOCAB = 100
HIDDEN = 32
HEADS = 4
HEAD_DIM = HIDDEN // HEADS
LAYERS = 2
INTER = 64
MAX_POS = 16
LN_EPS = 1e-12  # BERT default layernorm eps


# ------------------------- in-kernel math helpers -----------------------------
def _layernorm(h, g, b):
    mu = jnp.mean(h, axis=-1, keepdims=True)
    var = jnp.mean(jnp.square(h - mu), axis=-1, keepdims=True)
    return (h - mu) * jax.lax.rsqrt(var + LN_EPS) * g + b


def _gelu(x):
    # tanh approximation of BERT's erf-GELU (f32 math, EUP tanh)
    return 0.5 * x * (1.0 + jnp.tanh(0.7978845608028654 * (x + 0.044715 * x * x * x)))


def _bf16_dot(a_f32, w_bf16):
    # bf16 MXU inputs, f32 accumulation
    return jnp.dot(a_f32.astype(jnp.bfloat16), w_bf16,
                   preferred_element_type=jnp.float32)


# ------------------------------ fused kernel ----------------------------------
def _fused_bert_kernel(
    x_ref, bias_ref, emb_g_ref, emb_b_ref,
    wqkv_ref, bqkv_ref, wo_ref, bo_ref, ln1g_ref, ln1b_ref,
    wi_ref, bi_ref, wf_ref, bf_ref, ln2g_ref, ln2b_ref,
    pool_w_ref, pool_b_ref, fc_w_ref, fc_b_ref,
    out_ref,
    ctx_ref, cls_ref,
    *, batch, seq,
):
    scale = 1.0 / math.sqrt(HEAD_DIM)

    # embedding LayerNorm
    x = _layernorm(x_ref[...], emb_g_ref[...], emb_b_ref[...])      # (N, H) f32
    # block-diagonal additive attention bias: 0 where (same batch & key kept),
    # -1e9 elsewhere (padding + cross-batch).  Lets one matmul per head cover
    # every batch row at once.
    bias = bias_ref[...]                                             # (N, N) f32

    for l in range(LAYERS):                                          # static layer loop
        # ---- fused QKV projection: one matmul against (H, 3H) ----
        qkv = _bf16_dot(x, wqkv_ref[l]) + bqkv_ref[l]                # (N, 3H) f32

        # ---- attention: static head loop, all batch rows per iteration ----
        for h in range(HEADS):
            c0 = h * HEAD_DIM
            qh = qkv[:, c0:c0 + HEAD_DIM].astype(jnp.bfloat16)              # (N, Dh)
            kh = qkv[:, HIDDEN + c0:HIDDEN + c0 + HEAD_DIM].astype(jnp.bfloat16)
            vh = qkv[:, 2 * HIDDEN + c0:2 * HIDDEN + c0 + HEAD_DIM].astype(jnp.bfloat16)
            # q @ k^T over all rows (cross-batch entries masked by `bias`)
            s = jax.lax.dot_general(
                qh, kh, (((1,), (1,)), ((), ())),
                preferred_element_type=jnp.float32)                   # (N, N) f32
            s = s * scale + bias
            s = s - jnp.max(s, axis=-1, keepdims=True)
            p = jnp.exp(s)
            p = p * pl.reciprocal(jnp.sum(p, axis=-1, keepdims=True), approx=True)
            ctx_ref[:, c0:c0 + HEAD_DIM] = jnp.dot(
                p.astype(jnp.bfloat16), vh, preferred_element_type=jnp.float32)

        ctx = ctx_ref[...]                                           # (N, H) f32
        attn_out = _bf16_dot(ctx, wo_ref[l]) + bo_ref[l]
        x = _layernorm(attn_out + x, ln1g_ref[l], ln1b_ref[l])

        inter = _gelu(_bf16_dot(x, wi_ref[l]) + bi_ref[l])           # (N, INTER)
        ffn = _bf16_dot(inter, wf_ref[l]) + bf_ref[l]
        x = _layernorm(ffn + x, ln2g_ref[l], ln2b_ref[l])

    # ---- pooler ([CLS] rows) + fc head, still inside the same kernel ----
    for b in range(batch):
        cls_ref[b:b + 1, :] = x[b * seq:b * seq + 1, :]              # gather CLS rows
    pooled = jnp.tanh(_bf16_dot(cls_ref[...], pool_w_ref[...]) + pool_b_ref[...])
    # TODO(synk): nn.Dropout(0.1) is identity in eval mode; training-mode random mask not implemented.
    logits = _bf16_dot(pooled, fc_w_ref[...]) + fc_b_ref[...]        # (B, 1) f32
    out_ref[...] = logits.astype(out_ref.dtype)


# ------------------------- parameter construction ----------------------------
def init_params(key):
    def dense(k, fan_in, fan_out):
        return jax.random.normal(k, (fan_in, fan_out), jnp.float32) * 0.02

    keys = iter(jax.random.split(key, 64))
    params = {
        "word_emb": jax.random.normal(next(keys), (VOCAB, HIDDEN), jnp.float32) * 0.02,
        "pos_emb": jax.random.normal(next(keys), (MAX_POS, HIDDEN), jnp.float32) * 0.02,
        "type_emb": jax.random.normal(next(keys), (2, HIDDEN), jnp.float32) * 0.02,
        "emb_ln_g": jnp.ones((HIDDEN,), jnp.float32),
        "emb_ln_b": jnp.zeros((HIDDEN,), jnp.float32),
        "layers": [],
        "pool_w": dense(next(keys), HIDDEN, HIDDEN),
        "pool_b": jnp.zeros((HIDDEN,), jnp.float32),
        "fc_w": dense(next(keys), HIDDEN, 1),   # nn.Linear(hidden_size, 1)
        "fc_b": jnp.zeros((1,), jnp.float32),
    }
    for _ in range(LAYERS):
        params["layers"].append({
            "wq": dense(next(keys), HIDDEN, HIDDEN), "bq": jnp.zeros((HIDDEN,), jnp.float32),
            "wk": dense(next(keys), HIDDEN, HIDDEN), "bk": jnp.zeros((HIDDEN,), jnp.float32),
            "wv": dense(next(keys), HIDDEN, HIDDEN), "bv": jnp.zeros((HIDDEN,), jnp.float32),
            "wo": dense(next(keys), HIDDEN, HIDDEN), "bo": jnp.zeros((HIDDEN,), jnp.float32),
            "ln1_g": jnp.ones((HIDDEN,), jnp.float32), "ln1_b": jnp.zeros((HIDDEN,), jnp.float32),
            "wi": dense(next(keys), HIDDEN, INTER), "bi": jnp.zeros((INTER,), jnp.float32),
            "wf": dense(next(keys), INTER, HIDDEN), "bf": jnp.zeros((HIDDEN,), jnp.float32),
            "ln2_g": jnp.ones((HIDDEN,), jnp.float32), "ln2_b": jnp.zeros((HIDDEN,), jnp.float32),
        })
    return params


def _pack_layer_params(layers):
    """Stack per-layer params along a leading layer axis; matmul weights -> bf16."""
    def stk(fn):
        return jnp.stack([fn(ly) for ly in layers])
    return dict(
        wqkv=stk(lambda ly: jnp.concatenate([ly["wq"], ly["wk"], ly["wv"]], axis=1)
                 ).astype(jnp.bfloat16),                               # (L, H, 3H)
        bqkv=stk(lambda ly: jnp.concatenate([ly["bq"], ly["bk"], ly["bv"]])[None, :]),
        wo=stk(lambda ly: ly["wo"]).astype(jnp.bfloat16),
        bo=stk(lambda ly: ly["bo"][None, :]),
        ln1g=stk(lambda ly: ly["ln1_g"][None, :]),
        ln1b=stk(lambda ly: ly["ln1_b"][None, :]),
        wi=stk(lambda ly: ly["wi"]).astype(jnp.bfloat16),
        bi=stk(lambda ly: ly["bi"][None, :]),
        wf=stk(lambda ly: ly["wf"]).astype(jnp.bfloat16),
        bf=stk(lambda ly: ly["bf"][None, :]),
        ln2g=stk(lambda ly: ly["ln2_g"][None, :]),
        ln2b=stk(lambda ly: ly["ln2_b"][None, :]),
    )


# ------------------------------ forward pass ----------------------------------
def bert_classifier_forward(params, input_ids, attention_mask):
    """input_ids, attention_mask: (B, S) int32 -> logits (B, 1) float32."""
    B, S = input_ids.shape
    N = B * S

    # embeddings: word + position + token-type(0) (plain JAX gather / adds)
    emb = (jnp.take(params["word_emb"], input_ids, axis=0)
           + params["pos_emb"][:S][None, :, :]
           + params["type_emb"][0][None, None, :])
    x = emb.reshape(N, HIDDEN).astype(jnp.float32)

    # Full (N, N) additive attention bias: 0 where (same batch & key kept),
    # -1e9 elsewhere (padding and cross-batch).  This lets the kernel run
    # attention over all batch rows in one tile per head.
    batch_id = jnp.arange(N, dtype=jnp.int32) // S
    same_batch = batch_id[:, None] == batch_id[None, :]
    key_valid = attention_mask.reshape(N) > 0
    bias_full = jnp.where(same_batch & key_valid[None, :], 0.0, -1e9).astype(jnp.float32)

    p = _pack_layer_params(params["layers"])

    inputs = [
        x, bias_full,
        params["emb_ln_g"].reshape(1, HIDDEN), params["emb_ln_b"].reshape(1, HIDDEN),
        p["wqkv"], p["bqkv"], p["wo"], p["bo"], p["ln1g"], p["ln1b"],
        p["wi"], p["bi"], p["wf"], p["bf"], p["ln2g"], p["ln2b"],
        params["pool_w"].astype(jnp.bfloat16), params["pool_b"].reshape(1, HIDDEN),
        params["fc_w"].astype(jnp.bfloat16), params["fc_b"].reshape(1, 1),
    ]

    def _full_spec(shape):
        nd = len(shape)
        return pl.BlockSpec(shape, lambda i, _nd=nd: (0,) * _nd)

    kernel = functools.partial(_fused_bert_kernel, batch=B, seq=S)
    logits = pl.pallas_call(
        kernel,
        out_shape=jax.ShapeDtypeStruct((B, 1), jnp.float32),
        grid=(1,),
        in_specs=[_full_spec(a.shape) for a in inputs],
        out_specs=_full_spec((B, 1)),
        scratch_shapes=[
            pltpu.VMEM((N, HIDDEN), jnp.float32),   # merged-head attention context
            pltpu.VMEM((B, HIDDEN), jnp.float32),   # [CLS] rows for the pooler
        ],
        compiler_params=pltpu.CompilerParams(dimension_semantics=("arbitrary",)),
    )(*inputs)
    return logits


# ---------------------------------- main --------------------------------------
if __name__ == "__main__":
    key = jax.random.PRNGKey(0)
    pkey, ikey = jax.random.split(key)
    params = init_params(pkey)

    B, S = 2, 8
    input_ids = jax.random.randint(ikey, (B, S), 0, VOCAB, dtype=jnp.int32)
    attention_mask = jnp.array(
        [[1, 1, 1, 1, 1, 1, 0, 0],
         [1, 1, 1, 1, 1, 1, 1, 1]], dtype=jnp.int32)

    fwd = jax.jit(bert_classifier_forward)
    logits = fwd(params, input_ids, attention_mask)
    logits = jax.block_until_ready(logits)
    assert logits.shape == (B, 1) and logits.dtype == jnp.float32
    print("KERNEL_OK")
</pallas_src>

<mosaic_0001>
module attributes {stable_mosaic.version = 11 : i64} {
  func.func @_fused_bert_kernel(%arg0: i32, %arg1: memref<16x32xf32, #tpu.memory_space<vmem>>, %arg2: memref<16x16xf32, #tpu.memory_space<vmem>>, %arg3: memref<1x32xf32, #tpu.memory_space<vmem>>, %arg4: memref<1x32xf32, #tpu.memory_space<vmem>>, %arg5: memref<2x32x96xbf16, #tpu.memory_space<vmem>>, %arg6: memref<2x1x96xf32, #tpu.memory_space<vmem>>, %arg7: memref<2x32x32xbf16, #tpu.memory_space<vmem>>, %arg8: memref<2x1x32xf32, #tpu.memory_space<vmem>>, %arg9: memref<2x1x32xf32, #tpu.memory_space<vmem>>, %arg10: memref<2x1x32xf32, #tpu.memory_space<vmem>>, %arg11: memref<2x32x64xbf16, #tpu.memory_space<vmem>>, %arg12: memref<2x1x64xf32, #tpu.memory_space<vmem>>, %arg13: memref<2x64x32xbf16, #tpu.memory_space<vmem>>, %arg14: memref<2x1x32xf32, #tpu.memory_space<vmem>>, %arg15: memref<2x1x32xf32, #tpu.memory_space<vmem>>, %arg16: memref<2x1x32xf32, #tpu.memory_space<vmem>>, %arg17: memref<32x32xbf16, #tpu.memory_space<vmem>>, %arg18: memref<1x32xf32, #tpu.memory_space<vmem>>, %arg19: memref<32x1xbf16, #tpu.memory_space<vmem>>, %arg20: memref<1x1xf32, #tpu.memory_space<vmem>>, %arg21: memref<2x1xf32, #tpu.memory_space<vmem>>, %arg22: memref<16x32xf32, #tpu.memory_space<vmem>>, %arg23: memref<2x32xf32, #tpu.memory_space<vmem>>) attributes {dimension_semantics = [#tpu.dimension_semantics<arbitrary>], iteration_bounds = array<i64: 1>, scalar_prefetch = 0 : i64, scratch_operands = 2 : i64, tpu.core_type = #tpu.core_type<tc>, window_params = [{pipeline_mode = #tpu.pipeline_mode<synchronous>, transform_indices = @transform_0, window_bounds = array<i64: 16, 32>}, {pipeline_mode = #tpu.pipeline_mode<synchronous>, transform_indices = @transform_1, window_bounds = array<i64: 16, 16>}, {pipeline_mode = #tpu.pipeline_mode<synchronous>, transform_indices = @transform_2, window_bounds = array<i64: 1, 32>}, {pipeline_mode = #tpu.pipeline_mode<synchronous>, transform_indices = @transform_3, window_bounds = array<i64: 1, 32>}, {pipeline_mode = #tpu.pipeline_mode<synchronous>, transform_indices = @transform_4, window_bounds = array<i64: 2, 32, 96>}, {pipeline_mode = #tpu.pipeline_mode<synchronous>, transform_indices = @transform_5, window_bounds = array<i64: 2, 1, 96>}, {pipeline_mode = #tpu.pipeline_mode<synchronous>, transform_indices = @transform_6, window_bounds = array<i64: 2, 32, 32>}, {pipeline_mode = #tpu.pipeline_mode<synchronous>, transform_indices = @transform_7, window_bounds = array<i64: 2, 1, 32>}, {pipeline_mode = #tpu.pipeline_mode<synchronous>, transform_indices = @transform_8, window_bounds = array<i64: 2, 1, 32>}, {pipeline_mode = #tpu.pipeline_mode<synchronous>, transform_indices = @transform_9, window_bounds = array<i64: 2, 1, 32>}, {pipeline_mode = #tpu.pipeline_mode<synchronous>, transform_indices = @transform_10, window_bounds = array<i64: 2, 32, 64>}, {pipeline_mode = #tpu.pipeline_mode<synchronous>, transform_indices = @transform_11, window_bounds = array<i64: 2, 1, 64>}, {pipeline_mode = #tpu.pipeline_mode<synchronous>, transform_indices = @transform_12, window_bounds = array<i64: 2, 64, 32>}, {pipeline_mode = #tpu.pipeline_mode<synchronous>, transform_indices = @transform_13, window_bounds = array<i64: 2, 1, 32>}, {pipeline_mode = #tpu.pipeline_mode<synchronous>, transform_indices = @transform_14, window_bounds = array<i64: 2, 1, 32>}, {pipeline_mode = #tpu.pipeline_mode<synchronous>, transform_indices = @transform_15, window_bounds = array<i64: 2, 1, 32>}, {pipeline_mode = #tpu.pipeline_mode<synchronous>, transform_indices = @transform_16, window_bounds = array<i64: 32, 32>}, {pipeline_mode = #tpu.pipeline_mode<synchronous>, transform_indices = @transform_17, window_bounds = array<i64: 1, 32>}, {pipeline_mode = #tpu.pipeline_mode<synchronous>, transform_indices = @transform_18, window_bounds = array<i64: 32, 1>}, {pipeline_mode = #tpu.pipeline_mode<synchronous>, transform_indices = @transform_19, window_bounds = array<i64: 1, 1>}, {pipeline_mode = #tpu.pipeline_mode<synchronous>, transform_indices = @transform_20, window_bounds = array<i64: 2, 1>}]} {
    %c0 = arith.constant 0 : index
    %c0_0 = arith.constant 0 : index
    %0 = vector.load %arg1[%c0, %c0_0] : memref<16x32xf32, #tpu.memory_space<vmem>>, vector<16x32xf32>
    %c0_1 = arith.constant 0 : index
    %c0_2 = arith.constant 0 : index
    %1 = vector.load %arg3[%c0_1, %c0_2] : memref<1x32xf32, #tpu.memory_space<vmem>>, vector<1x32xf32>
    %c0_3 = arith.constant 0 : index
    %c0_4 = arith.constant 0 : index
    %2 = vector.load %arg4[%c0_3, %c0_4] : memref<1x32xf32, #tpu.memory_space<vmem>>, vector<1x32xf32>
    %cst = arith.constant dense<0.000000e+00> : vector<16xf32>
    %3 = vector.multi_reduction <add>, %0, %cst [1] : vector<16x32xf32> to vector<16xf32>
    %4 = vector.shape_cast %3 : vector<16xf32> to vector<16x1xf32>
    %cst_5 = arith.constant 3.200000e+01 : f32
    %5 = vector.broadcast %cst_5 : f32 to vector<16x1xf32>
    %6 = arith.divf %4, %5 : vector<16x1xf32>
    %7 = vector.broadcast %6 : vector<16x1xf32> to vector<16x32xf32>
    %8 = arith.subf %0, %7 : vector<16x32xf32>
    %9 = arith.mulf %8, %8 : vector<16x32xf32>
    %cst_6 = arith.constant dense<0.000000e+00> : vector<16xf32>
    %10 = vector.multi_reduction <add>, %9, %cst_6 [1] : vector<16x32xf32> to vector<16xf32>
    %11 = vector.shape_cast %10 : vector<16xf32> to vector<16x1xf32>
    %cst_7 = arith.constant 3.200000e+01 : f32
    %12 = vector.broadcast %cst_7 : f32 to vector<16x1xf32>
    %13 = arith.divf %11, %12 : vector<16x1xf32>
    %14 = vector.broadcast %6 : vector<16x1xf32> to vector<16x32xf32>
    %15 = arith.subf %0, %14 : vector<16x32xf32>
    %cst_8 = arith.constant 9.99999996E-13 : f32
    %16 = vector.broadcast %cst_8 : f32 to vector<16x1xf32>
    %17 = arith.addf %13, %16 : vector<16x1xf32>
    %18 = math.rsqrt %17 : vector<16x1xf32>
    %19 = vector.broadcast %18 : vector<16x1xf32> to vector<16x32xf32>
    %20 = arith.mulf %15, %19 : vector<16x32xf32>
    %21 = vector.broadcast %1 : vector<1x32xf32> to vector<16x32xf32>
    %22 = arith.mulf %20, %21 : vector<16x32xf32>
    %23 = vector.broadcast %2 : vector<1x32xf32> to vector<16x32xf32>
    %24 = arith.addf %22, %23 : vector<16x32xf32>
    %c0_9 = arith.constant 0 : index
    %c0_10 = arith.constant 0 : index
    %25 = vector.load %arg2[%c0_9, %c0_10] : memref<16x16xf32, #tpu.memory_space<vmem>>, vector<16x16xf32>
    %c0_11 = arith.constant 0 : index
    %c0_12 = arith.constant 0 : index
    %c0_13 = arith.constant 0 : index
    %26 = vector.load %arg5[%c0_11, %c0_12, %c0_13] : memref<2x32x96xbf16, #tpu.memory_space<vmem>>, vector<1x32x96xbf16>
    %27 = vector.shape_cast %26 : vector<1x32x96xbf16> to vector<32x96xbf16>
    %28 = arith.truncf %24 : vector<16x32xf32> to vector<16x32xbf16>
    %cst_14 = arith.constant dense<0.000000e+00> : vector<16x96xf32>
    %29 = tpu.matmul %28, %27, %cst_14 {dimension_numbers = #tpu.dot_dimension_numbers<[1], [0], [0], [1], [0, 0, 1, 1], [], []>} : vector<16x32xbf16>, vector<32x96xbf16>, vector<16x96xf32> -> vector<16x96xf32>
    %c0_15 = arith.constant 0 : index
    %c0_16 = arith.constant 0 : index
    %c0_17 = arith.constant 0 : index
    %30 = vector.load %arg6[%c0_15, %c0_16, %c0_17] : memref<2x1x96xf32, #tpu.memory_space<vmem>>, vector<1x1x96xf32>
    %31 = vector.shape_cast %30 : vector<1x1x96xf32> to vector<1x96xf32>
    %32 = vector.broadcast %31 : vector<1x96xf32> to vector<16x96xf32>
    %33 = arith.addf %29, %32 : vector<16x96xf32>
    %34 = vector.extract_strided_slice %33 {offsets = [0, 0], sizes = [16, 8], strides = [1, 1]} : vector<16x96xf32> to vector<16x8xf32>
    %35 = arith.truncf %34 : vector<16x8xf32> to vector<16x8xbf16>
    %36 = vector.extract_strided_slice %33 {offsets = [0, 32], sizes = [16, 8], strides = [1, 1]} : vector<16x96xf32> to vector<16x8xf32>
    %37 = arith.truncf %36 : vector<16x8xf32> to vector<16x8xbf16>
    %38 = vector.extract_strided_slice %33 {offsets = [0, 64], sizes = [16, 8], strides = [1, 1]} : vector<16x96xf32> to vector<16x8xf32>
    %39 = arith.truncf %38 : vector<16x8xf32> to vector<16x8xbf16>
    %cst_18 = arith.constant dense<0.000000e+00> : vector<16x16xf32>
    %40 = tpu.matmul %35, %37, %cst_18 {dimension_numbers = #tpu.dot_dimension_numbers<[1], [1], [0], [0], [0, 0, 1, 0], [], []>} : vector<16x8xbf16>, vector<16x8xbf16>, vector<16x16xf32> -> vector<16x16xf32>
    %cst_19 = arith.constant 0.353553385 : f32
    %41 = vector.broadcast %cst_19 : f32 to vector<16x16xf32>
    %42 = arith.mulf %40, %41 : vector<16x16xf32>
    %43 = arith.addf %42, %25 : vector<16x16xf32>
    %cst_20 = arith.constant dense<0xFF800000> : vector<16xf32>
    %44 = vector.multi_reduction <maximumf>, %43, %cst_20 [1] : vector<16x16xf32> to vector<16xf32>
    %45 = vector.shape_cast %44 : vector<16xf32> to vector<16x1xf32>
    %46 = vector.broadcast %45 : vector<16x1xf32> to vector<16x16xf32>
    %47 = arith.subf %43, %46 : vector<16x16xf32>
    %48 = math.exp %47 : vector<16x16xf32>
    %cst_21 = arith.constant dense<0.000000e+00> : vector<16xf32>
    %49 = vector.multi_reduction <add>, %48, %cst_21 [1] : vector<16x16xf32> to vector<16xf32>
    %50 = vector.shape_cast %49 : vector<16xf32> to vector<16x1xf32>
    %51 = tpu.reciprocal %50 {approx = true} : vector<16x1xf32> -> vector<16x1xf32>
    %52 = vector.broadcast %51 : vector<16x1xf32> to vector<16x16xf32>
    %53 = arith.mulf %48, %52 : vector<16x16xf32>
    %54 = arith.truncf %53 : vector<16x16xf32> to vector<16x16xbf16>
    %cst_22 = arith.constant dense<0.000000e+00> : vector<16x8xf32>
    %55 = tpu.matmul %54, %39, %cst_22 {dimension_numbers = #tpu.dot_dimension_numbers<[1], [0], [0], [1], [0, 0, 1, 1], [], []>} : vector<16x16xbf16>, vector<16x8xbf16>, vector<16x8xf32> -> vector<16x8xf32>
    %c0_23 = arith.constant 0 : index
    %c0_24 = arith.constant 0 : index
    %56 = vector.load %arg22[%c0_23, %c0_24] : memref<16x32xf32, #tpu.memory_space<vmem>>, vector<16x8xf32>
    tpu.vector_store %arg22[%c0_23, %c0_24], %55 {strides = array<i32>} : memref<16x32xf32, #tpu.memory_space<vmem>>, vector<16x8xf32>,
    %57 = vector.extract_strided_slice %33 {offsets = [0, 8], sizes = [16, 8], strides = [1, 1]} : vector<16x96xf32> to vector<16x8xf32>
    %58 = arith.truncf %57 : vector<16x8xf32> to vector<16x8xbf16>
    %59 = vector.extract_strided_slice %33 {offsets = [0, 40], sizes = [16, 8], strides = [1, 1]} : vector<16x96xf32> to vector<16x8xf32>
    %60 = arith.truncf %59 : vector<16x8xf32> to vector<16x8xbf16>
    %61 = vector.extract_strided_slice %33 {offsets = [0, 72], sizes = [16, 8], strides = [1, 1]} : vector<16x96xf32> to vector<16x8xf32>
    %62 = arith.truncf %61 : vector<16x8xf32> to vector<16x8xbf16>
    %cst_25 = arith.constant dense<0.000000e+00> : vector<16x16xf32>
    %63 = tpu.matmul %58, %60, %cst_25 {dimension_numbers = #tpu.dot_dimension_numbers<[1], [1], [0], [0], [0, 0, 1, 0], [], []>} : vector<16x8xbf16>, vector<16x8xbf16>, vector<16x16xf32> -> vector<16x16xf32>
    %cst_26 = arith.constant 0.353553385 : f32
    %64 = vector.broadcast %cst_26 : f32 to vector<16x16xf32>
    %65 = arith.mulf %63, %64 : vector<16x16xf32>
    %66 = arith.addf %65, %25 : vector<16x16xf32>
    %cst_27 = arith.constant dense<0xFF800000> : vector<16xf32>
    %67 = vector.multi_reduction <maximumf>, %66, %cst_27 [1] : vector<16x16xf32> to vector<16xf32>
    %68 = vector.shape_cast %67 : vector<16xf32> to vector<16x1xf32>
    %69 = vector.broadcast %68 : vector<16x1xf32> to vector<16x16xf32>
    %70 = arith.subf %66, %69 : vector<16x16xf32>
    %71 = math.exp %70 : vector<16x16xf32>
    %cst_28 = arith.constant dense<0.000000e+00> : vector<16xf32>
    %72 = vector.multi_reduction <add>, %71, %cst_28 [1] : vector<16x16xf32> to vector<16xf32>
    %73 = vector.shape_cast %72 : vector<16xf32> to vector<16x1xf32>
    %74 = tpu.reciprocal %73 {approx = true} : vector<16x1xf32> -> vector<16x1xf32>
    %75 = vector.broadcast %74 : vector<16x1xf32> to vector<16x16xf32>
    %76 = arith.mulf %71, %75 : vector<16x16xf32>
    %77 = arith.truncf %76 : vector<16x16xf32> to vector<16x16xbf16>
    %cst_29 = arith.constant dense<0.000000e+00> : vector<16x8xf32>
    %78 = tpu.matmul %77, %62, %cst_29 {dimension_numbers = #tpu.dot_dimension_numbers<[1], [0], [0], [1], [0, 0, 1, 1], [], []>} : vector<16x16xbf16>, vector<16x8xbf16>, vector<16x8xf32> -> vector<16x8xf32>
    %c0_30 = arith.constant 0 : index
    %c8 = arith.constant 8 : index
    %79 = vector.load %arg22[%c0_30, %c8] : memref<16x32xf32, #tpu.memory_space<vmem>>, vector<16x8xf32>
    tpu.vector_store %arg22[%c0_30, %c8], %78 {strides = array<i32>} : memref<16x32xf32, #tpu.memory_space<vmem>>, vector<16x8xf32>,
    %80 = vector.extract_strided_slice %33 {offsets = [0, 16], sizes = [16, 8], strides = [1, 1]} : vector<16x96xf32> to vector<16x8xf32>
    %81 = arith.truncf %80 : vector<16x8xf32> to vector<16x8xbf16>
    %82 = vector.extract_strided_slice %33 {offsets = [0, 48], sizes = [16, 8], strides = [1, 1]} : vector<16x96xf32> to vector<16x8xf32>
    %83 = arith.truncf %82 : vector<16x8xf32> to vector<16x8xbf16>
    %84 = vector.extract_strided_slice %33 {offsets = [0, 80], sizes = [16, 8], strides = [1, 1]} : vector<16x96xf32> to vector<16x8xf32>
    %85 = arith.truncf %84 : vector<16x8xf32> to vector<16x8xbf16>
    %cst_31 = arith.constant dense<0.000000e+00> : vector<16x16xf32>
    %86 = tpu.matmul %81, %83, %cst_31 {dimension_numbers = #tpu.dot_dimension_numbers<[1], [1], [0], [0], [0, 0, 1, 0], [], []>} : vector<16x8xbf16>, vector<16x8xbf16>, vector<16x16xf32> -> vector<16x16xf32>
    %cst_32 = arith.constant 0.353553385 : f32
    %87 = vector.broadcast %cst_32 : f32 to vector<16x16xf32>
    %88 = arith.mulf %86, %87 : vector<16x16xf32>
    %89 = arith.addf %88, %25 : vector<16x16xf32>
    %cst_33 = arith.constant dense<0xFF800000> : vector<16xf32>
    %90 = vector.multi_reduction <maximumf>, %89, %cst_33 [1] : vector<16x16xf32> to vector<16xf32>
    %91 = vector.shape_cast %90 : vector<16xf32> to vector<16x1xf32>
    %92 = vector.broadcast %91 : vector<16x1xf32> to vector<16x16xf32>
    %93 = arith.subf %89, %92 : vector<16x16xf32>
    %94 = math.exp %93 : vector<16x16xf32>
    %cst_34 = arith.constant dense<0.000000e+00> : vector<16xf32>
    %95 = vector.multi_reduction <add>, %94, %cst_34 [1] : vector<16x16xf32> to vector<16xf32>
    %96 = vector.shape_cast %95 : vector<16xf32> to vector<16x1xf32>
    %97 = tpu.reciprocal %96 {approx = true} : vector<16x1xf32> -> vector<16x1xf32>
    %98 = vector.broadcast %97 : vector<16x1xf32> to vector<16x16xf32>
    %99 = arith.mulf %94, %98 : vector<16x16xf32>
    %100 = arith.truncf %99 : vector<16x16xf32> to vector<16x16xbf16>
    %cst_35 = arith.constant dense<0.000000e+00> : vector<16x8xf32>
    %101 = tpu.matmul %100, %85, %cst_35 {dimension_numbers = #tpu.dot_dimension_numbers<[1], [0], [0], [1], [0, 0, 1, 1], [], []>} : vector<16x16xbf16>, vector<16x8xbf16>, vector<16x8xf32> -> vector<16x8xf32>
    %c0_36 = arith.constant 0 : index
    %c16 = arith.constant 16 : index
    %102 = vector.load %arg22[%c0_36, %c16] : memref<16x32xf32, #tpu.memory_space<vmem>>, vector<16x8xf32>
    tpu.vector_store %arg22[%c0_36, %c16], %101 {strides = array<i32>} : memref<16x32xf32, #tpu.memory_space<vmem>>, vector<16x8xf32>,
    %103 = vector.extract_strided_slice %33 {offsets = [0, 24], sizes = [16, 8], strides = [1, 1]} : vector<16x96xf32> to vector<16x8xf32>
    %104 = arith.truncf %103 : vector<16x8xf32> to vector<16x8xbf16>
    %105 = vector.extract_strided_slice %33 {offsets = [0, 56], sizes = [16, 8], strides = [1, 1]} : vector<16x96xf32> to vector<16x8xf32>
    %106 = arith.truncf %105 : vector<16x8xf32> to vector<16x8xbf16>
    %107 = vector.extract_strided_slice %33 {offsets = [0, 88], sizes = [16, 8], strides = [1, 1]} : vector<16x96xf32> to vector<16x8xf32>
    %108 = arith.truncf %107 : vector<16x8xf32> to vector<16x8xbf16>
    %cst_37 = arith.constant dense<0.000000e+00> : vector<16x16xf32>
    %109 = tpu.matmul %104, %106, %cst_37 {dimension_numbers = #tpu.dot_dimension_numbers<[1], [1], [0], [0], [0, 0, 1, 0], [], []>} : vector<16x8xbf16>, vector<16x8xbf16>, vector<16x16xf32> -> vector<16x16xf32>
    %cst_38 = arith.constant 0.353553385 : f32
    %110 = vector.broadcast %cst_38 : f32 to vector<16x16xf32>
    %111 = arith.mulf %109, %110 : vector<16x16xf32>
    %112 = arith.addf %111, %25 : vector<16x16xf32>
    %cst_39 = arith.constant dense<0xFF800000> : vector<16xf32>
    %113 = vector.multi_reduction <maximumf>, %112, %cst_39 [1] : vector<16x16xf32> to vector<16xf32>
    %114 = vector.shape_cast %113 : vector<16xf32> to vector<16x1xf32>
    %115 = vector.broadcast %114 : vector<16x1xf32> to vector<16x16xf32>
    %116 = arith.subf %112, %115 : vector<16x16xf32>
    %117 = math.exp %116 : vector<16x16xf32>
    %cst_40 = arith.constant dense<0.000000e+00> : vector<16xf32>
    %118 = vector.multi_reduction <add>, %117, %cst_40 [1] : vector<16x16xf32> to vector<16xf32>
    %119 = vector.shape_cast %118 : vector<16xf32> to vector<16x1xf32>
    %120 = tpu.reciprocal %119 {approx = true} : vector<16x1xf32> -> vector<16x1xf32>
    %121 = vector.broadcast %120 : vector<16x1xf32> to vector<16x16xf32>
    %122 = arith.mulf %117, %121 : vector<16x16xf32>
    %123 = arith.truncf %122 : vector<16x16xf32> to vector<16x16xbf16>
    %cst_41 = arith.constant dense<0.000000e+00> : vector<16x8xf32>
    %124 = tpu.matmul %123, %108, %cst_41 {dimension_numbers = #tpu.dot_dimension_numbers<[1], [0], [0], [1], [0, 0, 1, 1], [], []>} : vector<16x16xbf16>, vector<16x8xbf16>, vector<16x8xf32> -> vector<16x8xf32>
    %c0_42 = arith.constant 0 : index
    %c24 = arith.constant 24 : index
    %125 = vector.load %arg22[%c0_42, %c24] : memref<16x32xf32, #tpu.memory_space<vmem>>, vector<16x8xf32>
    tpu.vector_store %arg22[%c0_42, %c24], %124 {strides = array<i32>} : memref<16x32xf32, #tpu.memory_space<vmem>>, vector<16x8xf32>,
    %c0_43 = arith.constant 0 : index
    %c0_44 = arith.constant 0 : index
    %126 = vector.load %arg22[%c0_43, %c0_44] : memref<16x32xf32, #tpu.memory_space<vmem>>, vector<16x32xf32>
    %c0_45 = arith.constant 0 : index
    %c0_46 = arith.constant 0 : index
    %c0_47 = arith.constant 0 : index
    %127 = vector.load %arg7[%c0_45, %c0_46, %c0_47] : memref<2x32x32xbf16, #tpu.memory_space<vmem>>, vector<1x32x32xbf16>
    %128 = vector.shape_cast %127 : vector<1x32x32xbf16> to vector<32x32xbf16>
    %129 = arith.truncf %126 : vector<16x32xf32> to vector<16x32xbf16>
    %cst_48 = arith.constant dense<0.000000e+00> : vector<16x32xf32>
    %130 = tpu.matmul %129, %128, %cst_48 {dimension_numbers = #tpu.dot_dimension_numbers<[1], [0], [0], [1], [0, 0, 1, 1], [], []>} : vector<16x32xbf16>, vector<32x32xbf16>, vector<16x32xf32> -> vector<16x32xf32>
    %c0_49 = arith.constant 0 : index
    %c0_50 = arith.constant 0 : index
    %c0_51 = arith.constant 0 : index
    %131 = vector.load %arg8[%c0_49, %c0_50, %c0_51] : memref<2x1x32xf32, #tpu.memory_space<vmem>>, vector<1x1x32xf32>
    %132 = vector.shape_cast %131 : vector<1x1x32xf32> to vector<1x32xf32>
    %133 = vector.broadcast %132 : vector<1x32xf32> to vector<16x32xf32>
    %134 = arith.addf %130, %133 : vector<16x32xf32>
    %135 = arith.addf %134, %24 : vector<16x32xf32>
    %c0_52 = arith.constant 0 : index
    %c0_53 = arith.constant 0 : index
    %c0_54 = arith.constant 0 : index
    %136 = vector.load %arg9[%c0_52, %c0_53, %c0_54] : memref<2x1x32xf32, #tpu.memory_space<vmem>>, vector<1x1x32xf32>
    %137 = vector.shape_cast %136 : vector<1x1x32xf32> to vector<1x32xf32>
    %c0_55 = arith.constant 0 : index
    %c0_56 = arith.constant 0 : index
    %c0_57 = arith.constant 0 : index
    %138 = vector.load %arg10[%c0_55, %c0_56, %c0_57] : memref<2x1x32xf32, #tpu.memory_space<vmem>>, vector<1x1x32xf32>
    %139 = vector.shape_cast %138 : vector<1x1x32xf32> to vector<1x32xf32>
    %cst_58 = arith.constant dense<0.000000e+00> : vector<16xf32>
    %140 = vector.multi_reduction <add>, %135, %cst_58 [1] : vector<16x32xf32> to vector<16xf32>
    %141 = vector.shape_cast %140 : vector<16xf32> to vector<16x1xf32>
    %cst_59 = arith.constant 3.200000e+01 : f32
    %142 = vector.broadcast %cst_59 : f32 to vector<16x1xf32>
    %143 = arith.divf %141, %142 : vector<16x1xf32>
    %144 = vector.broadcast %143 : vector<16x1xf32> to vector<16x32xf32>
    %145 = arith.subf %135, %144 : vector<16x32xf32>
    %146 = arith.mulf %145, %145 : vector<16x32xf32>
    %cst_60 = arith.constant dense<0.000000e+00> : vector<16xf32>
    %147 = vector.multi_reduction <add>, %146, %cst_60 [1] : vector<16x32xf32> to vector<16xf32>
    %148 = vector.shape_cast %147 : vector<16xf32> to vector<16x1xf32>
    %cst_61 = arith.constant 3.200000e+01 : f32
    %149 = vector.broadcast %cst_61 : f32 to vector<16x1xf32>
    %150 = arith.divf %148, %149 : vector<16x1xf32>
    %151 = vector.broadcast %143 : vector<16x1xf32> to vector<16x32xf32>
    %152 = arith.subf %135, %151 : vector<16x32xf32>
    %cst_62 = arith.constant 9.99999996E-13 : f32
    %153 = vector.broadcast %cst_62 : f32 to vector<16x1xf32>
    %154 = arith.addf %150, %153 : vector<16x1xf32>
    %155 = math.rsqrt %154 : vector<16x1xf32>
    %156 = vector.broadcast %155 : vector<16x1xf32> to vector<16x32xf32>
    %157 = arith.mulf %152, %156 : vector<16x32xf32>
    %158 = vector.broadcast %137 : vector<1x32xf32> to vector<16x32xf32>
    %159 = arith.mulf %157, %158 : vector<16x32xf32>
    %160 = vector.broadcast %139 : vector<1x32xf32> to vector<16x32xf32>
    %161 = arith.addf %159, %160 : vector<16x32xf32>
    %c0_63 = arith.constant 0 : index
    %c0_64 = arith.constant 0 : index
    %c0_65 = arith.constant 0 : index
    %162 = vector.load %arg11[%c0_63, %c0_64, %c0_65] : memref<2x32x64xbf16, #tpu.memory_space<vmem>>, vector<1x32x64xbf16>
    %163 = vector.shape_cast %162 : vector<1x32x64xbf16> to vector<32x64xbf16>
    %164 = arith.truncf %161 : vector<16x32xf32> to vector<16x32xbf16>
    %cst_66 = arith.constant dense<0.000000e+00> : vector<16x64xf32>
    %165 = tpu.matmul %164, %163, %cst_66 {dimension_numbers = #tpu.dot_dimension_numbers<[1], [0], [0], [1], [0, 0, 1, 1], [], []>} : vector<16x32xbf16>, vector<32x64xbf16>, vector<16x64xf32> -> vector<16x64xf32>
    %c0_67 = arith.constant 0 : index
    %c0_68 = arith.constant 0 : index
    %c0_69 = arith.constant 0 : index
    %166 = vector.load %arg12[%c0_67, %c0_68, %c0_69] : memref<2x1x64xf32, #tpu.memory_space<vmem>>, vector<1x1x64xf32>
    %167 = vector.shape_cast %166 : vector<1x1x64xf32> to vector<1x64xf32>
    %168 = vector.broadcast %167 : vector<1x64xf32> to vector<16x64xf32>
    %169 = arith.addf %165, %168 : vector<16x64xf32>
    %cst_70 = arith.constant 5.000000e-01 : f32
    %170 = vector.broadcast %cst_70 : f32 to vector<16x64xf32>
    %171 = arith.mulf %170, %169 : vector<16x64xf32>
    %cst_71 = arith.constant 4.471500e-02 : f32
    %172 = vector.broadcast %cst_71 : f32 to vector<16x64xf32>
    %173 = arith.mulf %172, %169 : vector<16x64xf32>
    %174 = arith.mulf %173, %169 : vector<16x64xf32>
    %175 = arith.mulf %174, %169 : vector<16x64xf32>
    %176 = arith.addf %169, %175 : vector<16x64xf32>
    %cst_72 = arith.constant 0.797884583 : f32
    %177 = vector.broadcast %cst_72 : f32 to vector<16x64xf32>
    %178 = arith.mulf %177, %176 : vector<16x64xf32>
    %179 = math.tanh %178 : vector<16x64xf32>
    %cst_73 = arith.constant 1.000000e+00 : f32
    %180 = vector.broadcast %cst_73 : f32 to vector<16x64xf32>
    %181 = arith.addf %180, %179 : vector<16x64xf32>
    %182 = arith.mulf %171, %181 : vector<16x64xf32>
    %c0_74 = arith.constant 0 : index
    %c0_75 = arith.constant 0 : index
    %c0_76 = arith.constant 0 : index
    %183 = vector.load %arg13[%c0_74, %c0_75, %c0_76] : memref<2x64x32xbf16, #tpu.memory_space<vmem>>, vector<1x64x32xbf16>
    %184 = vector.shape_cast %183 : vector<1x64x32xbf16> to vector<64x32xbf16>
    %185 = arith.truncf %182 : vector<16x64xf32> to vector<16x64xbf16>
    %cst_77 = arith.constant dense<0.000000e+00> : vector<16x32xf32>
    %186 = tpu.matmul %185, %184, %cst_77 {dimension_numbers = #tpu.dot_dimension_numbers<[1], [0], [0], [1], [0, 0, 1, 1], [], []>} : vector<16x64xbf16>, vector<64x32xbf16>, vector<16x32xf32> -> vector<16x32xf32>
    %c0_78 = arith.constant 0 : index
    %c0_79 = arith.constant 0 : index
    %c0_80 = arith.constant 0 : index
    %187 = vector.load %arg14[%c0_78, %c0_79, %c0_80] : memref<2x1x32xf32, #tpu.memory_space<vmem>>, vector<1x1x32xf32>
    %188 = vector.shape_cast %187 : vector<1x1x32xf32> to vector<1x32xf32>
    %189 = vector.broadcast %188 : vector<1x32xf32> to vector<16x32xf32>
    %190 = arith.addf %186, %189 : vector<16x32xf32>
    %191 = arith.addf %190, %161 : vector<16x32xf32>
    %c0_81 = arith.constant 0 : index
    %c0_82 = arith.constant 0 : index
    %c0_83 = arith.constant 0 : index
    %192 = vector.load %arg15[%c0_81, %c0_82, %c0_83] : memref<2x1x32xf32, #tpu.memory_space<vmem>>, vector<1x1x32xf32>
    %193 = vector.shape_cast %192 : vector<1x1x32xf32> to vector<1x32xf32>
    %c0_84 = arith.constant 0 : index
    %c0_85 = arith.constant 0 : index
    %c0_86 = arith.constant 0 : index
    %194 = vector.load %arg16[%c0_84, %c0_85, %c0_86] : memref<2x1x32xf32, #tpu.memory_space<vmem>>, vector<1x1x32xf32>
    %195 = vector.shape_cast %194 : vector<1x1x32xf32> to vector<1x32xf32>
    %cst_87 = arith.constant dense<0.000000e+00> : vector<16xf32>
    %196 = vector.multi_reduction <add>, %191, %cst_87 [1] : vector<16x32xf32> to vector<16xf32>
    %197 = vector.shape_cast %196 : vector<16xf32> to vector<16x1xf32>
    %cst_88 = arith.constant 3.200000e+01 : f32
    %198 = vector.broadcast %cst_88 : f32 to vector<16x1xf32>
    %199 = arith.divf %197, %198 : vector<16x1xf32>
    %200 = vector.broadcast %199 : vector<16x1xf32> to vector<16x32xf32>
    %201 = arith.subf %191, %200 : vector<16x32xf32>
    %202 = arith.mulf %201, %201 : vector<16x32xf32>
    %cst_89 = arith.constant dense<0.000000e+00> : vector<16xf32>
    %203 = vector.multi_reduction <add>, %202, %cst_89 [1] : vector<16x32xf32> to vector<16xf32>
    %204 = vector.shape_cast %203 : vector<16xf32> to vector<16x1xf32>
    %cst_90 = arith.constant 3.200000e+01 : f32
    %205 = vector.broadcast %cst_90 : f32 to vector<16x1xf32>
    %206 = arith.divf %204, %205 : vector<16x1xf32>
    %207 = vector.broadcast %199 : vector<16x1xf32> to vector<16x32xf32>
    %208 = arith.subf %191, %207 : vector<16x32xf32>
    %cst_91 = arith.constant 9.99999996E-13 : f32
    %209 = vector.broadcast %cst_91 : f32 to vector<16x1xf32>
    %210 = arith.addf %206, %209 : vector<16x1xf32>
    %211 = math.rsqrt %210 : vector<16x1xf32>
    %212 = vector.broadcast %211 : vector<16x1xf32> to vector<16x32xf32>
    %213 = arith.mulf %208, %212 : vector<16x32xf32>
    %214 = vector.broadcast %193 : vector<1x32xf32> to vector<16x32xf32>
    %215 = arith.mulf %213, %214 : vector<16x32xf32>
    %216 = vector.broadcast %195 : vector<1x32xf32> to vector<16x32xf32>
    %217 = arith.addf %215, %216 : vector<16x32xf32>
    %c1 = arith.constant 1 : index
    %c0_92 = arith.constant 0 : index
    %c0_93 = arith.constant 0 : index
    %218 = vector.load %arg5[%c1, %c0_92, %c0_93] : memref<2x32x96xbf16, #tpu.memory_space<vmem>>, vector<1x32x96xbf16>
    %219 = vector.shape_cast %218 : vector<1x32x96xbf16> to vector<32x96xbf16>
    %220 = arith.truncf %217 : vector<16x32xf32> to vector<16x32xbf16>
    %cst_94 = arith.constant dense<0.000000e+00> : vector<16x96xf32>
    %221 = tpu.matmul %220, %219, %cst_94 {dimension_numbers = #tpu.dot_dimension_numbers<[1], [0], [0], [1], [0, 0, 1, 1], [], []>} : vector<16x32xbf16>, vector<32x96xbf16>, vector<16x96xf32> -> vector<16x96xf32>
    %c1_95 = arith.constant 1 : index
    %c0_96 = arith.constant 0 : index
    %c0_97 = arith.constant 0 : index
    %222 = vector.load %arg6[%c1_95, %c0_96, %c0_97] : memref<2x1x96xf32, #tpu.memory_space<vmem>>, vector<1x1x96xf32>
    %223 = vector.shape_cast %222 : vector<1x1x96xf32> to vector<1x96xf32>
    %224 = vector.broadcast %223 : vector<1x96xf32> to vector<16x96xf32>
    %225 = arith.addf %221, %224 : vector<16x96xf32>
    %226 = vector.extract_strided_slice %225 {offsets = [0, 0], sizes = [16, 8], strides = [1, 1]} : vector<16x96xf32> to vector<16x8xf32>
    %227 = arith.truncf %226 : vector<16x8xf32> to vector<16x8xbf16>
    %228 = vector.extract_strided_slice %225 {offsets = [0, 32], sizes = [16, 8], strides = [1, 1]} : vector<16x96xf32> to vector<16x8xf32>
    %229 = arith.truncf %228 : vector<16x8xf32> to vector<16x8xbf16>
    %230 = vector.extract_strided_slice %225 {offsets = [0, 64], sizes = [16, 8], strides = [1, 1]} : vector<16x96xf32> to vector<16x8xf32>
    %231 = arith.truncf %230 : vector<16x8xf32> to vector<16x8xbf16>
    %cst_98 = arith.constant dense<0.000000e+00> : vector<16x16xf32>
    %232 = tpu.matmul %227, %229, %cst_98 {dimension_numbers = #tpu.dot_dimension_numbers<[1], [1], [0], [0], [0, 0, 1, 0], [], []>} : vector<16x8xbf16>, vector<16x8xbf16>, vector<16x16xf32> -> vector<16x16xf32>
    %cst_99 = arith.constant 0.353553385 : f32
    %233 = vector.broadcast %cst_99 : f32 to vector<16x16xf32>
    %234 = arith.mulf %232, %233 : vector<16x16xf32>
    %235 = arith.addf %234, %25 : vector<16x16xf32>
    %cst_100 = arith.constant dense<0xFF800000> : vector<16xf32>
    %236 = vector.multi_reduction <maximumf>, %235, %cst_100 [1] : vector<16x16xf32> to vector<16xf32>
    %237 = vector.shape_cast %236 : vector<16xf32> to vector<16x1xf32>
    %238 = vector.broadcast %237 : vector<16x1xf32> to vector<16x16xf32>
    %239 = arith.subf %235, %238 : vector<16x16xf32>
    %240 = math.exp %239 : vector<16x16xf32>
    %cst_101 = arith.constant dense<0.000000e+00> : vector<16xf32>
    %241 = vector.multi_reduction <add>, %240, %cst_101 [1] : vector<16x16xf32> to vector<16xf32>
    %242 = vector.shape_cast %241 : vector<16xf32> to vector<16x1xf32>
    %243 = tpu.reciprocal %242 {approx = true} : vector<16x1xf32> -> vector<16x1xf32>
    %244 = vector.broadcast %243 : vector<16x1xf32> to vector<16x16xf32>
    %245 = arith.mulf %240, %244 : vector<16x16xf32>
    %246 = arith.truncf %245 : vector<16x16xf32> to vector<16x16xbf16>
    %cst_102 = arith.constant dense<0.000000e+00> : vector<16x8xf32>
    %247 = tpu.matmul %246, %231, %cst_102 {dimension_numbers = #tpu.dot_dimension_numbers<[1], [0], [0], [1], [0, 0, 1, 1], [], []>} : vector<16x16xbf16>, vector<16x8xbf16>, vector<16x8xf32> -> vector<16x8xf32>
    %c0_103 = arith.constant 0 : index
    %c0_104 = arith.constant 0 : index
    %248 = vector.load %arg22[%c0_103, %c0_104] : memref<16x32xf32, #tpu.memory_space<vmem>>, vector<16x8xf32>
    tpu.vector_store %arg22[%c0_103, %c0_104], %247 {strides = array<i32>} : memref<16x32xf32, #tpu.memory_space<vmem>>, vector<16x8xf32>,
    %249 = vector.extract_strided_slice %225 {offsets = [0, 8], sizes = [16, 8], strides = [1, 1]} : vector<16x96xf32> to vector<16x8xf32>
    %250 = arith.truncf %249 : vector<16x8xf32> to vector<16x8xbf16>
    %251 = vector.extract_strided_slice %225 {offsets = [0, 40], sizes = [16, 8], strides = [1, 1]} : vector<16x96xf32> to vector<16x8xf32>
    %252 = arith.truncf %251 : vector<16x8xf32> to vector<16x8xbf16>
    %253 = vector.extract_strided_slice %225 {offsets = [0, 72], sizes = [16, 8], strides = [1, 1]} : vector<16x96xf32> to vector<16x8xf32>
    %254 = arith.truncf %253 : vector<16x8xf32> to vector<16x8xbf16>
    %cst_105 = arith.constant dense<0.000000e+00> : vector<16x16xf32>
    %255 = tpu.matmul %250, %252, %cst_105 {dimension_numbers = #tpu.dot_dimension_numbers<[1], [1], [0], [0], [0, 0, 1, 0], [], []>} : vector<16x8xbf16>, vector<16x8xbf16>, vector<16x16xf32> -> vector<16x16xf32>
    %cst_106 = arith.constant 0.353553385 : f32
    %256 = vector.broadcast %cst_106 : f32 to vector<16x16xf32>
    %257 = arith.mulf %255, %256 : vector<16x16xf32>
    %258 = arith.addf %257, %25 : vector<16x16xf32>
    %cst_107 = arith.constant dense<0xFF800000> : vector<16xf32>
    %259 = vector.multi_reduction <maximumf>, %258, %cst_107 [1] : vector<16x16xf32> to vector<16xf32>
    %260 = vector.shape_cast %259 : vector<16xf32> to vector<16x1xf32>
    %261 = vector.broadcast %260 : vector<16x1xf32> to vector<16x16xf32>
    %262 = arith.subf %258, %261 : vector<16x16xf32>
    %263 = math.exp %262 : vector<16x16xf32>
    %cst_108 = arith.constant dense<0.000000e+00> : vector<16xf32>
    %264 = vector.multi_reduction <add>, %263, %cst_108 [1] : vector<16x16xf32> to vector<16xf32>
    %265 = vector.shape_cast %264 : vector<16xf32> to vector<16x1xf32>
    %266 = tpu.reciprocal %265 {approx = true} : vector<16x1xf32> -> vector<16x1xf32>
    %267 = vector.broadcast %266 : vector<16x1xf32> to vector<16x16xf32>
    %268 = arith.mulf %263, %267 : vector<16x16xf32>
    %269 = arith.truncf %268 : vector<16x16xf32> to vector<16x16xbf16>
    %cst_109 = arith.constant dense<0.000000e+00> : vector<16x8xf32>
    %270 = tpu.matmul %269, %254, %cst_109 {dimension_numbers = #tpu.dot_dimension_numbers<[1], [0], [0], [1], [0, 0, 1, 1], [], []>} : vector<16x16xbf16>, vector<16x8xbf16>, vector<16x8xf32> -> vector<16x8xf32>
    %c0_110 = arith.constant 0 : index
    %c8_111 = arith.constant 8 : index
    %271 = vector.load %arg22[%c0_110, %c8_111] : memref<16x32xf32, #tpu.memory_space<vmem>>, vector<16x8xf32>
    tpu.vector_store %arg22[%c0_110, %c8_111], %270 {strides = array<i32>} : memref<16x32xf32, #tpu.memory_space<vmem>>, vector<16x8xf32>,
    %272 = vector.extract_strided_slice %225 {offsets = [0, 16], sizes = [16, 8], strides = [1, 1]} : vector<16x96xf32> to vector<16x8xf32>
    %273 = arith.truncf %272 : vector<16x8xf32> to vector<16x8xbf16>
    %274 = vector.extract_strided_slice %225 {offsets = [0, 48], sizes = [16, 8], strides = [1, 1]} : vector<16x96xf32> to vector<16x8xf32>
    %275 = arith.truncf %274 : vector<16x8xf32> to vector<16x8xbf16>
    %276 = vector.extract_strided_slice %225 {offsets = [0, 80], sizes = [16, 8], strides = [1, 1]} : vector<16x96xf32> to vector<16x8xf32>
    %277 = arith.truncf %276 : vector<16x8xf32> to vector<16x8xbf16>
    %cst_112 = arith.constant dense<0.000000e+00> : vector<16x16xf32>
    %278 = tpu.matmul %273, %275, %cst_112 {dimension_numbers = #tpu.dot_dimension_numbers<[1], [1], [0], [0], [0, 0, 1, 0], [], []>} : vector<16x8xbf16>, vector<16x8xbf16>, vector<16x16xf32> -> vector<16x16xf32>
    %cst_113 = arith.constant 0.353553385 : f32
    %279 = vector.broadcast %cst_113 : f32 to vector<16x16xf32>
    %280 = arith.mulf %278, %279 : vector<16x16xf32>
    %281 = arith.addf %280, %25 : vector<16x16xf32>
    %cst_114 = arith.constant dense<0xFF800000> : vector<16xf32>
    %282 = vector.multi_reduction <maximumf>, %281, %cst_114 [1] : vector<16x16xf32> to vector<16xf32>
    %283 = vector.shape_cast %282 : vector<16xf32> to vector<16x1xf32>
    %284 = vector.broadcast %283 : vector<16x1xf32> to vector<16x16xf32>
    %285 = arith.subf %281, %284 : vector<16x16xf32>
    %286 = math.exp %285 : vector<16x16xf32>
    %cst_115 = arith.constant dense<0.000000e+00> : vector<16xf32>
    %287 = vector.multi_reduction <add>, %286, %cst_115 [1] : vector<16x16xf32> to vector<16xf32>
    %288 = vector.shape_cast %287 : vector<16xf32> to vector<16x1xf32>
    %289 = tpu.reciprocal %288 {approx = true} : vector<16x1xf32> -> vector<16x1xf32>
    %290 = vector.broadcast %289 : vector<16x1xf32> to vector<16x16xf32>
    %291 = arith.mulf %286, %290 : vector<16x16xf32>
    %292 = arith.truncf %291 : vector<16x16xf32> to vector<16x16xbf16>
    %cst_116 = arith.constant dense<0.000000e+00> : vector<16x8xf32>
    %293 = tpu.matmul %292, %277, %cst_116 {dimension_numbers = #tpu.dot_dimension_numbers<[1], [0], [0], [1], [0, 0, 1, 1], [], []>} : vector<16x16xbf16>, vector<16x8xbf16>, vector<16x8xf32> -> vector<16x8xf32>
    %c0_117 = arith.constant 0 : index
    %c16_118 = arith.constant 16 : index
    %294 = vector.load %arg22[%c0_117, %c16_118] : memref<16x32xf32, #tpu.memory_space<vmem>>, vector<16x8xf32>
    tpu.vector_store %arg22[%c0_117, %c16_118], %293 {strides = array<i32>} : memref<16x32xf32, #tpu.memory_space<vmem>>, vector<16x8xf32>,
    %295 = vector.extract_strided_slice %225 {offsets = [0, 24], sizes = [16, 8], strides = [1, 1]} : vector<16x96xf32> to vector<16x8xf32>
    %296 = arith.truncf %295 : vector<16x8xf32> to vector<16x8xbf16>
    %297 = vector.extract_strided_slice %225 {offsets = [0, 56], sizes = [16, 8], strides = [1, 1]} : vector<16x96xf32> to vector<16x8xf32>
    %298 = arith.truncf %297 : vector<16x8xf32> to vector<16x8xbf16>
    %299 = vector.extract_strided_slice %225 {offsets = [0, 88], sizes = [16, 8], strides = [1, 1]} : vector<16x96xf32> to vector<16x8xf32>
    %300 = arith.truncf %299 : vector<16x8xf32> to vector<16x8xbf16>
    %cst_119 = arith.constant dense<0.000000e+00> : vector<16x16xf32>
    %301 = tpu.matmul %296, %298, %cst_119 {dimension_numbers = #tpu.dot_dimension_numbers<[1], [1], [0], [0], [0, 0, 1, 0], [], []>} : vector<16x8xbf16>, vector<16x8xbf16>, vector<16x16xf32> -> vector<16x16xf32>
    %cst_120 = arith.constant 0.353553385 : f32
    %302 = vector.broadcast %cst_120 : f32 to vector<16x16xf32>
    %303 = arith.mulf %301, %302 : vector<16x16xf32>
    %304 = arith.addf %303, %25 : vector<16x16xf32>
    %cst_121 = arith.constant dense<0xFF800000> : vector<16xf32>
    %305 = vector.multi_reduction <maximumf>, %304, %cst_121 [1] : vector<16x16xf32> to vector<16xf32>
    %306 = vector.shape_cast %305 : vector<16xf32> to vector<16x1xf32>
    %307 = vector.broadcast %306 : vector<16x1xf32> to vector<16x16xf32>
    %308 = arith.subf %304, %307 : vector<16x16xf32>
    %309 = math.exp %308 : vector<16x16xf32>
    %cst_122 = arith.constant dense<0.000000e+00> : vector<16xf32>
    %310 = vector.multi_reduction <add>, %309, %cst_122 [1] : vector<16x16xf32> to vector<16xf32>
    %311 = vector.shape_cast %310 : vector<16xf32> to vector<16x1xf32>
    %312 = tpu.reciprocal %311 {approx = true} : vector<16x1xf32> -> vector<16x1xf32>
    %313 = vector.broadcast %312 : vector<16x1xf32> to vector<16x16xf32>
    %314 = arith.mulf %309, %313 : vector<16x16xf32>
    %315 = arith.truncf %314 : vector<16x16xf32> to vector<16x16xbf16>
    %cst_123 = arith.constant dense<0.000000e+00> : vector<16x8xf32>
    %316 = tpu.matmul %315, %300, %cst_123 {dimension_numbers = #tpu.dot_dimension_numbers<[1], [0], [0], [1], [0, 0, 1, 1], [], []>} : vector<16x16xbf16>, vector<16x8xbf16>, vector<16x8xf32> -> vector<16x8xf32>
    %c0_124 = arith.constant 0 : index
    %c24_125 = arith.constant 24 : index
    %317 = vector.load %arg22[%c0_124, %c24_125] : memref<16x32xf32, #tpu.memory_space<vmem>>, vector<16x8xf32>
    tpu.vector_store %arg22[%c0_124, %c24_125], %316 {strides = array<i32>} : memref<16x32xf32, #tpu.memory_space<vmem>>, vector<16x8xf32>,
    %c0_126 = arith.constant 0 : index
    %c0_127 = arith.constant 0 : index
    %318 = vector.load %arg22[%c0_126, %c0_127] : memref<16x32xf32, #tpu.memory_space<vmem>>, vector<16x32xf32>
    %c1_128 = arith.constant 1 : index
    %c0_129 = arith.constant 0 : index
    %c0_130 = arith.constant 0 : index
    %319 = vector.load %arg7[%c1_128, %c0_129, %c0_130] : memref<2x32x32xbf16, #tpu.memory_space<vmem>>, vector<1x32x32xbf16>
    %320 = vector.shape_cast %319 : vector<1x32x32xbf16> to vector<32x32xbf16>
    %321 = arith.truncf %318 : vector<16x32xf32> to vector<16x32xbf16>
    %cst_131 = arith.constant dense<0.000000e+00> : vector<16x32xf32>
    %322 = tpu.matmul %321, %320, %cst_131 {dimension_numbers = #tpu.dot_dimension_numbers<[1], [0], [0], [1], [0, 0, 1, 1], [], []>} : vector<16x32xbf16>, vector<32x32xbf16>, vector<16x32xf32> -> vector<16x32xf32>
    %c1_132 = arith.constant 1 : index
    %c0_133 = arith.constant 0 : index
    %c0_134 = arith.constant 0 : index
    %323 = vector.load %arg8[%c1_132, %c0_133, %c0_134] : memref<2x1x32xf32, #tpu.memory_space<vmem>>, vector<1x1x32xf32>
    %324 = vector.shape_cast %323 : vector<1x1x32xf32> to vector<1x32xf32>
    %325 = vector.broadcast %324 : vector<1x32xf32> to vector<16x32xf32>
    %326 = arith.addf %322, %325 : vector<16x32xf32>
    %327 = arith.addf %326, %217 : vector<16x32xf32>
    %c1_135 = arith.constant 1 : index
    %c0_136 = arith.constant 0 : index
    %c0_137 = arith.constant 0 : index
    %328 = vector.load %arg9[%c1_135, %c0_136, %c0_137] : memref<2x1x32xf32, #tpu.memory_space<vmem>>, vector<1x1x32xf32>
    %329 = vector.shape_cast %328 : vector<1x1x32xf32> to vector<1x32xf32>
    %c1_138 = arith.constant 1 : index
    %c0_139 = arith.constant 0 : index
    %c0_140 = arith.constant 0 : index
    %330 = vector.load %arg10[%c1_138, %c0_139, %c0_140] : memref<2x1x32xf32, #tpu.memory_space<vmem>>, vector<1x1x32xf32>
    %331 = vector.shape_cast %330 : vector<1x1x32xf32> to vector<1x32xf32>
    %cst_141 = arith.constant dense<0.000000e+00> : vector<16xf32>
    %332 = vector.multi_reduction <add>, %327, %cst_141 [1] : vector<16x32xf32> to vector<16xf32>
    %333 = vector.shape_cast %332 : vector<16xf32> to vector<16x1xf32>
    %cst_142 = arith.constant 3.200000e+01 : f32
    %334 = vector.broadcast %cst_142 : f32 to vector<16x1xf32>
    %335 = arith.divf %333, %334 : vector<16x1xf32>
    %336 = vector.broadcast %335 : vector<16x1xf32> to vector<16x32xf32>
    %337 = arith.subf %327, %336 : vector<16x32xf32>
    %338 = arith.mulf %337, %337 : vector<16x32xf32>
    %cst_143 = arith.constant dense<0.000000e+00> : vector<16xf32>
    %339 = vector.multi_reduction <add>, %338, %cst_143 [1] : vector<16x32xf32> to vector<16xf32>
    %340 = vector.shape_cast %339 : vector<16xf32> to vector<16x1xf32>
    %cst_144 = arith.constant 3.200000e+01 : f32
    %341 = vector.broadcast %cst_144 : f32 to vector<16x1xf32>
    %342 = arith.divf %340, %341 : vector<16x1xf32>
    %343 = vector.broadcast %335 : vector<16x1xf32> to vector<16x32xf32>
    %344 = arith.subf %327, %343 : vector<16x32xf32>
    %cst_145 = arith.constant 9.99999996E-13 : f32
    %345 = vector.broadcast %cst_145 : f32 to vector<16x1xf32>
    %346 = arith.addf %342, %345 : vector<16x1xf32>
    %347 = math.rsqrt %346 : vector<16x1xf32>
    %348 = vector.broadcast %347 : vector<16x1xf32> to vector<16x32xf32>
    %349 = arith.mulf %344, %348 : vector<16x32xf32>
    %350 = vector.broadcast %329 : vector<1x32xf32> to vector<16x32xf32>
    %351 = arith.mulf %349, %350 : vector<16x32xf32>
    %352 = vector.broadcast %331 : vector<1x32xf32> to vector<16x32xf32>
    %353 = arith.addf %351, %352 : vector<16x32xf32>
    %c1_146 = arith.constant 1 : index
    %c0_147 = arith.constant 0 : index
    %c0_148 = arith.constant 0 : index
    %354 = vector.load %arg11[%c1_146, %c0_147, %c0_148] : memref<2x32x64xbf16, #tpu.memory_space<vmem>>, vector<1x32x64xbf16>
    %355 = vector.shape_cast %354 : vector<1x32x64xbf16> to vector<32x64xbf16>
    %356 = arith.truncf %353 : vector<16x32xf32> to vector<16x32xbf16>
    %cst_149 = arith.constant dense<0.000000e+00> : vector<16x64xf32>
    %357 = tpu.matmul %356, %355, %cst_149 {dimension_numbers = #tpu.dot_dimension_numbers<[1], [0], [0], [1], [0, 0, 1, 1], [], []>} : vector<16x32xbf16>, vector<32x64xbf16>, vector<16x64xf32> -> vector<16x64xf32>
    %c1_150 = arith.constant 1 : index
    %c0_151 = arith.constant 0 : index
    %c0_152 = arith.constant 0 : index
    %358 = vector.load %arg12[%c1_150, %c0_151, %c0_152] : memref<2x1x64xf32, #tpu.memory_space<vmem>>, vector<1x1x64xf32>
    %359 = vector.shape_cast %358 : vector<1x1x64xf32> to vector<1x64xf32>
    %360 = vector.broadcast %359 : vector<1x64xf32> to vector<16x64xf32>
    %361 = arith.addf %357, %360 : vector<16x64xf32>
    %cst_153 = arith.constant 5.000000e-01 : f32
    %362 = vector.broadcast %cst_153 : f32 to vector<16x64xf32>
    %363 = arith.mulf %362, %361 : vector<16x64xf32>
    %cst_154 = arith.constant 4.471500e-02 : f32
    %364 = vector.broadcast %cst_154 : f32 to vector<16x64xf32>
    %365 = arith.mulf %364, %361 : vector<16x64xf32>
    %366 = arith.mulf %365, %361 : vector<16x64xf32>
    %367 = arith.mulf %366, %361 : vector<16x64xf32>
    %368 = arith.addf %361, %367 : vector<16x64xf32>
    %cst_155 = arith.constant 0.797884583 : f32
    %369 = vector.broadcast %cst_155 : f32 to vector<16x64xf32>
    %370 = arith.mulf %369, %368 : vector<16x64xf32>
    %371 = math.tanh %370 : vector<16x64xf32>
    %cst_156 = arith.constant 1.000000e+00 : f32
    %372 = vector.broadcast %cst_156 : f32 to vector<16x64xf32>
    %373 = arith.addf %372, %371 : vector<16x64xf32>
    %374 = arith.mulf %363, %373 : vector<16x64xf32>
    %c1_157 = arith.constant 1 : index
    %c0_158 = arith.constant 0 : index
    %c0_159 = arith.constant 0 : index
    %375 = vector.load %arg13[%c1_157, %c0_158, %c0_159] : memref<2x64x32xbf16, #tpu.memory_space<vmem>>, vector<1x64x32xbf16>
    %376 = vector.shape_cast %375 : vector<1x64x32xbf16> to vector<64x32xbf16>
    %377 = arith.truncf %374 : vector<16x64xf32> to vector<16x64xbf16>
    %cst_160 = arith.constant dense<0.000000e+00> : vector<16x32xf32>
    %378 = tpu.matmul %377, %376, %cst_160 {dimension_numbers = #tpu.dot_dimension_numbers<[1], [0], [0], [1], [0, 0, 1, 1], [], []>} : vector<16x64xbf16>, vector<64x32xbf16>, vector<16x32xf32> -> vector<16x32xf32>
    %c1_161 = arith.constant 1 : index
    %c0_162 = arith.constant 0 : index
    %c0_163 = arith.constant 0 : index
    %379 = vector.load %arg14[%c1_161, %c0_162, %c0_163] : memref<2x1x32xf32, #tpu.memory_space<vmem>>, vector<1x1x32xf32>
    %380 = vector.shape_cast %379 : vector<1x1x32xf32> to vector<1x32xf32>
    %381 = vector.broadcast %380 : vector<1x32xf32> to vector<16x32xf32>
    %382 = arith.addf %378, %381 : vector<16x32xf32>
    %383 = arith.addf %382, %353 : vector<16x32xf32>
    %c1_164 = arith.constant 1 : index
    %c0_165 = arith.constant 0 : index
    %c0_166 = arith.constant 0 : index
    %384 = vector.load %arg15[%c1_164, %c0_165, %c0_166] : memref<2x1x32xf32, #tpu.memory_space<vmem>>, vector<1x1x32xf32>
    %385 = vector.shape_cast %384 : vector<1x1x32xf32> to vector<1x32xf32>
    %c1_167 = arith.constant 1 : index
    %c0_168 = arith.constant 0 : index
    %c0_169 = arith.constant 0 : index
    %386 = vector.load %arg16[%c1_167, %c0_168, %c0_169] : memref<2x1x32xf32, #tpu.memory_space<vmem>>, vector<1x1x32xf32>
    %387 = vector.shape_cast %386 : vector<1x1x32xf32> to vector<1x32xf32>
    %cst_170 = arith.constant dense<0.000000e+00> : vector<16xf32>
    %388 = vector.multi_reduction <add>, %383, %cst_170 [1] : vector<16x32xf32> to vector<16xf32>
    %389 = vector.shape_cast %388 : vector<16xf32> to vector<16x1xf32>
    %cst_171 = arith.constant 3.200000e+01 : f32
    %390 = vector.broadcast %cst_171 : f32 to vector<16x1xf32>
    %391 = arith.divf %389, %390 : vector<16x1xf32>
    %392 = vector.broadcast %391 : vector<16x1xf32> to vector<16x32xf32>
    %393 = arith.subf %383, %392 : vector<16x32xf32>
    %394 = arith.mulf %393, %393 : vector<16x32xf32>
    %cst_172 = arith.constant dense<0.000000e+00> : vector<16xf32>
    %395 = vector.multi_reduction <add>, %394, %cst_172 [1] : vector<16x32xf32> to vector<16xf32>
    %396 = vector.shape_cast %395 : vector<16xf32> to vector<16x1xf32>
    %cst_173 = arith.constant 3.200000e+01 : f32
    %397 = vector.broadcast %cst_173 : f32 to vector<16x1xf32>
    %398 = arith.divf %396, %397 : vector<16x1xf32>
    %399 = vector.broadcast %391 : vector<16x1xf32> to vector<16x32xf32>
    %400 = arith.subf %383, %399 : vector<16x32xf32>
    %cst_174 = arith.constant 9.99999996E-13 : f32
    %401 = vector.broadcast %cst_174 : f32 to vector<16x1xf32>
    %402 = arith.addf %398, %401 : vector<16x1xf32>
    %403 = math.rsqrt %402 : vector<16x1xf32>
    %404 = vector.broadcast %403 : vector<16x1xf32> to vector<16x32xf32>
    %405 = arith.mulf %400, %404 : vector<16x32xf32>
    %406 = vector.broadcast %385 : vector<1x32xf32> to vector<16x32xf32>
    %407 = arith.mulf %405, %406 : vector<16x32xf32>
    %408 = vector.broadcast %387 : vector<1x32xf32> to vector<16x32xf32>
    %409 = arith.addf %407, %408 : vector<16x32xf32>
    %410 = vector.extract_strided_slice %409 {offsets = [0, 0], sizes = [1, 32], strides = [1, 1]} : vector<16x32xf32> to vector<1x32xf32>
    %c0_175 = arith.constant 0 : index
    %c0_176 = arith.constant 0 : index
    %411 = vector.load %arg23[%c0_175, %c0_176] : memref<2x32xf32, #tpu.memory_space<vmem>>, vector<1x32xf32>
    tpu.vector_store %arg23[%c0_175, %c0_176], %410 {strides = array<i32>} : memref<2x32xf32, #tpu.memory_space<vmem>>, vector<1x32xf32>,
    %412 = vector.extract_strided_slice %409 {offsets = [8, 0], sizes = [1, 32], strides = [1, 1]} : vector<16x32xf32> to vector<1x32xf32>
    %c1_177 = arith.constant 1 : index
    %c0_178 = arith.constant 0 : index
    %413 = vector.load %arg23[%c1_177, %c0_178] : memref<2x32xf32, #tpu.memory_space<vmem>>, vector<1x32xf32>
    tpu.vector_store %arg23[%c1_177, %c0_178], %412 {strides = array<i32>} : memref<2x32xf32, #tpu.memory_space<vmem>>, vector<1x32xf32>,
    %c0_179 = arith.constant 0 : index
    %c0_180 = arith.constant 0 : index
    %414 = vector.load %arg23[%c0_179, %c0_180] : memref<2x32xf32, #tpu.memory_space<vmem>>, vector<2x32xf32>
    %c0_181 = arith.constant 0 : index
    %c0_182 = arith.constant 0 : index
    %415 = vector.load %arg17[%c0_181, %c0_182] : memref<32x32xbf16, #tpu.memory_space<vmem>>, vector<32x32xbf16>
    %416 = arith.truncf %414 : vector<2x32xf32> to vector<2x32xbf16>
    %cst_183 = arith.constant dense<0.000000e+00> : vector<2x32xf32>
    %417 = tpu.matmul %416, %415, %cst_183 {dimension_numbers = #tpu.dot_dimension_numbers<[1], [0], [0], [1], [0, 0, 1, 1], [], []>} : vector<2x32xbf16>, vector<32x32xbf16>, vector<2x32xf32> -> vector<2x32xf32>
    %c0_184 = arith.constant 0 : index
    %c0_185 = arith.constant 0 : index
    %418 = vector.load %arg18[%c0_184, %c0_185] : memref<1x32xf32, #tpu.memory_space<vmem>>, vector<1x32xf32>
    %419 = vector.broadcast %418 : vector<1x32xf32> to vector<2x32xf32>
    %420 = arith.addf %417, %419 : vector<2x32xf32>
    %421 = math.tanh %420 : vector<2x32xf32>
    %c0_186 = arith.constant 0 : index
    %c0_187 = arith.constant 0 : index
    %422 = vector.load %arg19[%c0_186, %c0_187] : memref<32x1xbf16, #tpu.memory_space<vmem>>, vector<32x1xbf16>
    %423 = arith.truncf %421 : vector<2x32xf32> to vector<2x32xbf16>
    %cst_188 = arith.constant dense<0.000000e+00> : vector<2x1xf32>
    %424 = tpu.matmul %423, %422, %cst_188 {dimension_numbers = #tpu.dot_dimension_numbers<[1], [0], [0], [1], [0, 0, 1, 1], [], []>} : vector<2x32xbf16>, vector<32x1xbf16>, vector<2x1xf32> -> vector<2x1xf32>
    %c0_189 = arith.constant 0 : index
    %c0_190 = arith.constant 0 : index
    %425 = vector.load %arg20[%c0_189, %c0_190] : memref<1x1xf32, #tpu.memory_space<vmem>>, vector<1x1xf32>
    %426 = vector.broadcast %425 : vector<1x1xf32> to vector<2x1xf32>
    %427 = arith.addf %424, %426 : vector<2x1xf32>
    %c0_191 = arith.constant 0 : index
    %c0_192 = arith.constant 0 : index
    %428 = vector.load %arg21[%c0_191, %c0_192] : memref<2x1xf32, #tpu.memory_space<vmem>>, vector<2x1xf32>
    tpu.vector_store %arg21[%c0_191, %c0_192], %427 {strides = array<i32>} : memref<2x1xf32, #tpu.memory_space<vmem>>, vector<2x1xf32>,
    return
  }
  func.func @transform_0(%arg0: i32) -> (i32, i32) {
    %c0_i32 = arith.constant 0 : i32
    %c0_i32_0 = arith.constant 0 : i32
    %c0_i32_1 = arith.constant 0 : i32
    return %c0_i32, %c0_i32_0 : i32, i32
  }
  func.func @transform_1(%arg0: i32) -> (i32, i32) {
    %c0_i32 = arith.constant 0 : i32
    %c0_i32_0 = arith.constant 0 : i32
    %c0_i32_1 = arith.constant 0 : i32
    return %c0_i32, %c0_i32_0 : i32, i32
  }
  func.func @transform_2(%arg0: i32) -> (i32, i32) {
    %c0_i32 = arith.constant 0 : i32
    %c0_i32_0 = arith.constant 0 : i32
    %c0_i32_1 = arith.constant 0 : i32
    return %c0_i32, %c0_i32_0 : i32, i32
  }
  func.func @transform_3(%arg0: i32) -> (i32, i32) {
    %c0_i32 = arith.constant 0 : i32
    %c0_i32_0 = arith.constant 0 : i32
    %c0_i32_1 = arith.constant 0 : i32
    return %c0_i32, %c0_i32_0 : i32, i32
  }
  func.func @transform_4(%arg0: i32) -> (i32, i32, i32) {
    %c0_i32 = arith.constant 0 : i32
    %c0_i32_0 = arith.constant 0 : i32
    %c0_i32_1 = arith.constant 0 : i32
    %c0_i32_2 = arith.constant 0 : i32
    return %c0_i32, %c0_i32_0, %c0_i32_1 : i32, i32, i32
  }
  func.func @transform_5(%arg0: i32) -> (i32, i32, i32) {
    %c0_i32 = arith.constant 0 : i32
    %c0_i32_0 = arith.constant 0 : i32
    %c0_i32_1 = arith.constant 0 : i32
    %c0_i32_2 = arith.constant 0 : i32
    return %c0_i32, %c0_i32_0, %c0_i32_1 : i32, i32, i32
  }
  func.func @transform_6(%arg0: i32) -> (i32, i32, i32) {
    %c0_i32 = arith.constant 0 : i32
    %c0_i32_0 = arith.constant 0 : i32
    %c0_i32_1 = arith.constant 0 : i32
    %c0_i32_2 = arith.constant 0 : i32
    return %c0_i32, %c0_i32_0, %c0_i32_1 : i32, i32, i32
  }
  func.func @transform_7(%arg0: i32) -> (i32, i32, i32) {
    %c0_i32 = arith.constant 0 : i32
    %c0_i32_0 = arith.constant 0 : i32
    %c0_i32_1 = arith.constant 0 : i32
    %c0_i32_2 = arith.constant 0 : i32
    return %c0_i32, %c0_i32_0, %c0_i32_1 : i32, i32, i32
  }
  func.func @transform_8(%arg0: i32) -> (i32, i32, i32) {
    %c0_i32 = arith.constant 0 : i32
    %c0_i32_0 = arith.constant 0 : i32
    %c0_i32_1 = arith.constant 0 : i32
    %c0_i32_2 = arith.constant 0 : i32
    return %c0_i32, %c0_i32_0, %c0_i32_1 : i32, i32, i32
  }
  func.func @transform_9(%arg0: i32) -> (i32, i32, i32) {
    %c0_i32 = arith.constant 0 : i32
    %c0_i32_0 = arith.constant 0 : i32
    %c0_i32_1 = arith.constant 0 : i32
    %c0_i32_2 = arith.constant 0 : i32
    return %c0_i32, %c0_i32_0, %c0_i32_1 : i32, i32, i32
  }
  func.func @transform_10(%arg0: i32) -> (i32, i32, i32) {
    %c0_i32 = arith.constant 0 : i32
    %c0_i32_0 = arith.constant 0 : i32
    %c0_i32_1 = arith.constant 0 : i32
    %c0_i32_2 = arith.constant 0 : i32
    return %c0_i32, %c0_i32_0, %c0_i32_1 : i32, i32, i32
  }
  func.func @transform_11(%arg0: i32) -> (i32, i32, i32) {
    %c0_i32 = arith.constant 0 : i32
    %c0_i32_0 = arith.constant 0 : i32
    %c0_i32_1 = arith.constant 0 : i32
    %c0_i32_2 = arith.constant 0 : i32
    return %c0_i32, %c0_i32_0, %c0_i32_1 : i32, i32, i32
  }
  func.func @transform_12(%arg0: i32) -> (i32, i32, i32) {
    %c0_i32 = arith.constant 0 : i32
    %c0_i32_0 = arith.constant 0 : i32
    %c0_i32_1 = arith.constant 0 : i32
    %c0_i32_2 = arith.constant 0 : i32
    return %c0_i32, %c0_i32_0, %c0_i32_1 : i32, i32, i32
  }
  func.func @transform_13(%arg0: i32) -> (i32, i32, i32) {
    %c0_i32 = arith.constant 0 : i32
    %c0_i32_0 = arith.constant 0 : i32
    %c0_i32_1 = arith.constant 0 : i32
    %c0_i32_2 = arith.constant 0 : i32
    return %c0_i32, %c0_i32_0, %c0_i32_1 : i32, i32, i32
  }
  func.func @transform_14(%arg0: i32) -> (i32, i32, i32) {
    %c0_i32 = arith.constant 0 : i32
    %c0_i32_0 = arith.constant 0 : i32
    %c0_i32_1 = arith.constant 0 : i32
    %c0_i32_2 = arith.constant 0 : i32
    return %c0_i32, %c0_i32_0, %c0_i32_1 : i32, i32, i32
  }
  func.func @transform_15(%arg0: i32) -> (i32, i32, i32) {
    %c0_i32 = arith.constant 0 : i32
    %c0_i32_0 = arith.constant 0 : i32
    %c0_i32_1 = arith.constant 0 : i32
    %c0_i32_2 = arith.constant 0 : i32
    return %c0_i32, %c0_i32_0, %c0_i32_1 : i32, i32, i32
  }
  func.func @transform_16(%arg0: i32) -> (i32, i32) {
    %c0_i32 = arith.constant 0 : i32
    %c0_i32_0 = arith.constant 0 : i32
    %c0_i32_1 = arith.constant 0 : i32
    return %c0_i32, %c0_i32_0 : i32, i32
  }
  func.func @transform_17(%arg0: i32) -> (i32, i32) {
    %c0_i32 = arith.constant 0 : i32
    %c0_i32_0 = arith.constant 0 : i32
    %c0_i32_1 = arith.constant 0 : i32
    return %c0_i32, %c0_i32_0 : i32, i32
  }
  func.func @transform_18(%arg0: i32) -> (i32, i32) {
    %c0_i32 = arith.constant 0 : i32
    %c0_i32_0 = arith.constant 0 : i32
    %c0_i32_1 = arith.constant 0 : i32
    return %c0_i32, %c0_i32_0 : i32, i32
  }
  func.func @transform_19(%arg0: i32) -> (i32, i32) {
    %c0_i32 = arith.constant 0 : i32
    %c0_i32_0 = arith.constant 0 : i32
    %c0_i32_1 = arith.constant 0 : i32
    return %c0_i32, %c0_i32_0 : i32, i32
  }
  func.func @transform_20(%arg0: i32) -> (i32, i32) {
    %c0_i32 = arith.constant 0 : i32
    %c0_i32_0 = arith.constant 0 : i32
    %c0_i32_1 = arith.constant 0 : i32
    return %c0_i32, %c0_i32_0 : i32, i32
  }
}

</mosaic_0001>

<bundles_post_ra>
// kernel: bert_classifier_forward.1
= control target key start
LH: loop header
LB: loop body
LE: loop exit
PB: predicated region body
PF: predicated region fallthrough
CT: control target
= control target key end

     0   :  { %vm72_vm0 = vcmask 261120   ;;  %v2627_v15 = vmov 0.0   ;;  %vm2628_vm1 = vmmov 0   ;;  %s2630_s25 = smov 96   ;;  %s2632_s27 = smov 112   ;;  %vm190_vm2 = vcmask 64512   ;;  %s3191_s0 = inlined_call_operand.vmem [shape: f32[16,32], index: 0, kind: input, shape index: {}]   ;;  %s3192_s4 = inlined_call_operand.vmem [shape: bf16[2,32,96], index: 4, kind: input, shape index: {}]   ;;  %s3193_s2 = inlined_call_operand.vmem [shape: f32[1,32], index: 2, kind: input, shape index: {}]   ;;  %s3194_s3 = inlined_call_operand.vmem [shape: f32[1,32], index: 3, kind: input, shape index: {}]   ;;  %s3195_s5 = inlined_call_operand.vmem [shape: f32[2,1,96], index: 5, kind: input, shape index: {}]   ;;  %s3196_s1 = inlined_call_operand.vmem [shape: f32[16,16], index: 1, kind: input, shape index: {}]   ;;  %s3197_s6 = inlined_call_operand.vmem [shape: bf16[2,32,32], index: 6, kind: input, shape index: {}]   ;;  %s3198_s7 = inlined_call_operand.vmem [shape: f32[2,1,32], index: 7, kind: input, shape index: {}]   ;;  %s3199_s10 = inlined_call_operand.vmem [shape: bf16[2,32,64], index: 10, kind: input, shape index: {}]   ;;  %s3200_s8 = inlined_call_operand.vmem [shape: f32[2,1,32], index: 8, kind: input, shape index: {}]   ;;  %s3201_s9 = inlined_call_operand.vmem [shape: f32[2,1,32], index: 9, kind: input, shape index: {}]   ;;  %s3202_s12 = inlined_call_operand.vmem [shape: bf16[2,64,32], index: 12, kind: input, shape index: {}]   ;;  %s3203_s11 = inlined_call_operand.vmem [shape: f32[2,1,64], index: 11, kind: input, shape index: {}]   ;;  %s3204_s13 = inlined_call_operand.vmem [shape: f32[2,1,32], index: 13, kind: input, shape index: {}]   ;;  %s3205_s14 = inlined_call_operand.vmem [shape: f32[2,1,32], index: 14, kind: input, shape index: {}]   ;;  %s3206_s15 = inlined_call_operand.vmem [shape: f32[2,1,32], index: 15, kind: input, shape index: {}]   ;;  %s3207_s16 = inlined_call_operand.vmem [shape: bf16[32,32], index: 16, kind: input, shape index: {}]   ;;  %s3208_s18 = inlined_call_operand.vmem [shape: bf16[32,1], index: 18, kind: input, shape index: {}]   ;;  %s3209_s19 = inlined_call_operand.<no memory space> [shape: f32[1,1], index: 19, kind: input, shape index: {}]   ;;  %s3210_s17 = inlined_call_operand.vmem [shape: f32[1,32], index: 17, kind: input, shape index: {}]   ;;  %s3211_s20 = inlined_call_operand.vmem [shape: f32[2,1], index: 20, kind: output, shape index: {}]  }
   0x1   :  { %3226 = sst [smem:[#allocation5_spill]] %s3191_s0  ;;  %2309 = vmatprep.subr.bf16.mxu0 %v2627_v15  ;;  %2317 = vmatprep.subr.bf16.mxu1 %v2627_v15  ;;  %s2633_s28 = smov 80   ;;  %v2830_v54 = vld [vmem:[%s3196_s1] sm:$0xff]  ;;  %vm242_vm3 = vcmask 130048   ;;  %v2835_v58 = vld [vmem:[%s3196_s1 + $0x8] sm:$0xff]  ;;  %vm448_vm4 = vcmask 130112  }
   0x2   :  { %3227 = sst [smem:[#allocation6_spill]] %s3192_s4  ;;  %s3231_s23 = sld [smem:[#allocation5_spill]]  ;;  %2313 = vmatprep.mubr.msk.bf16.mxu0 %vm2628_vm1, %v2627_v15  ;;  %2319 = vmatprep.mubr.msk.bf16.mxu1 %vm2628_vm1, %v2627_v15  ;;  %vm584_vm5 = vcmask 195712   ;;  %vm720_vm6 = vcmask 261312   ;;  %vm965_vm7 = vcmask 523264   ;;  %vm2000_vm8 = vcmask 253952  }
   0x3   :  { %3228 = sst [smem:[#allocation7_spill]] %s3193_s2  ;;  %s3232_s26 = sld [smem:[#allocation6_spill]]  ;;  %vm2139_vm9 = vcmask 1024  }
   0x4   :  { %3229 = sst [smem:[#allocation8_spill]] %s3194_s3  ;;  %s3233_s30 = sld [smem:[#allocation7_spill]] }
   0x5   :  { %3230 = sst [smem:[#allocation9_spill]] %s3195_s5  ;;  %s3234_s4 = sld [smem:[#allocation8_spill]] }
   0x6   :  { %s3235_s24 = sld [smem:[#allocation9_spill]]  ;;  %s2629_s2 = smov 88  }
   0x7   :  { %s2631_s3 = smov 120   ;;  %s3225_s5 = smov 104  }
   0x8   :  { %v68_v0 = vld [vmem:[%s3231_s23] sm:$0xff]  ;;  %v69_v1 = vld [vmem:[%s3231_s23 + $0x8] sm:$0xff]  ;;  %s2635_s29 = smov 72   ;;  %s3216_s1 = smov 64  }
   0x9   :  { %v73_v2 = vsel %vm72_vm0, %v68_v0, 0.0  ;;  %v76_v3 = vsel %vm72_vm0, %v69_v1, 0.0  ;;  %v2509_v14 = vld [vmem:[%s3232_s26] sm:$0xff]   ;;  %v2510_v16 = vld [vmem:[%s3232_s26 + $0x8] sm:$0xff]   ;;  %s3217_s22 = smov 48   ;;  %s3215_s23 = smov 40  }
   0xa   :  { %74 = vadd.xlane.f32.xlu0 %v73_v2  ;;  %2310 = vmatpush3.bf16.msra.mxu0 %v2509_v14  ;;  %v2145_v25 = vld [vmem:[%s3233_s30] ss:$0 sm:$0xff]  ;;  %s3224_s30 = smov 56   ;;  %s3222_s0 = smov 8  }
   0xb   :  { %2311 = vmatprep.subr.bf16.mxu0 %v2627_v15  ;;  %v2146_v29 = vld [vmem:[%s3234_s4] ss:$0 sm:$0xff]  ;;  %s3218_s21 = smov 24  }
   0xc   :  { %v2147_v34 = vld [vmem:[%s3235_s24] ss:$0 sm:$0xff] }
   0xe   :  { %77 = vadd.xlane.f32.xlu0 %v76_v3  ;;  %2312 = vmatpush3.bf16.msra.mxu0 %v2510_v16 }
   0xf   :  { %2323 = vmatprep.subr.bf16.mxu0 %v2627_v15 }
  0x97   :  { %v75_v4 = vpop.xlane.xlu0 %74 }
  0x98   :  { %v80_v5 = vmul.f32 0.03125, %v75_v4 }
  0x9a   :  { %v82_v6 = vsub.f32 %v68_v0, %v80_v5 }
  0x9b   :  { %v78_v7 = vpop.xlane.xlu0 %77 }
  0x9c   :  { %v81_v8 = vmul.f32 0.03125, %v78_v7  ;;  %v84_v9 = vmul.f32 %v82_v6, %v82_v6 }
  0x9e   :  { %v83_v10 = vsub.f32 %v69_v1, %v81_v8  ;;  %v86_v11 = vsel %vm72_vm0, %v84_v9, 0.0 }
  0x9f   :  { %87 = vadd.xlane.f32.xlu1 %v86_v11 }
  0xa0   :  { %v85_v12 = vmul.f32 %v83_v10, %v83_v10 }
  0xa2   :  { %v89_v13 = vsel %vm72_vm0, %v85_v12, 0.0 }
  0xa3   :  { %90 = vadd.xlane.f32.xlu1 %v89_v13 }
 0x12c   :  { %v88_v17 = vpop.xlane.xlu1 %87 }
 0x12d   :  { %v92_v18 = vmul.f32 0.03125, %v88_v17 }
 0x12f   :  { %v94_v19 = vadd.f32 1e-12, %v92_v18 }
 0x130   :  { %v91_v20 = vpop.xlane.xlu1 %90 }
 0x131   :  { %2533 = vrsqrt.f32 %v94_v19  ;;  %v93_v21 = vmul.f32 0.03125, %v91_v20 }
 0x133   :  { %v95_v22 = vadd.f32 1e-12, %v93_v21 }
 0x135   :  { %2535 = vrsqrt.f32 %v95_v22 }
 0x13b   :  { %v2534_v23 = vpop.eup %2533 }
 0x13c   :  { %v98_v24 = vmul.f32 %v2534_v23, %v82_v6 }
 0x13e   :  { %v106_v28 = vmul.f32 %v2145_v25, %v98_v24 }
 0x13f   :  { %v2536_v26 = vpop.eup %2535 }
 0x140   :  { %v99_v27 = vmul.f32 %v2536_v26, %v83_v10  ;;  %v2778_v31 = vadd.f32 %v2146_v29, %v106_v28 }
 0x142   :  { %v107_v30 = vmul.f32 %v2145_v25, %v99_v27 }
 0x144   :  { %v2780_v32 = vadd.f32 %v2146_v29, %v107_v30 }
 0x146   :  { %v122_v33 = vpack.c.bf16 %v2780_v32, %v2778_v31 }
 0x148   :  { %2314 = vmatmul.mubr.msk.bf16.vlgmr.msra.gmra.mrb[0].mxu0 %vm72_vm0, %v122_v33 }
 0x149   :  { %2325 = vmatprep.mubr.msk.bf16.mxu0 %vm2628_vm1, %v2627_v15 }
 0x21b   :  { %v179_v35 = vpop.f32.mrb[0].mxu0 }
 0x21c   :  { %v2315_v36 = vpop.f32.mrb[1].mxu0  ;;  %v180_v38 = vadd.f32 %v2147_v34, %v179_v35 }
 0x21d   :  { %v182_v37 = vpop.f32.mrb[2].mxu0 }
 0x21e   :  { %v183_v39 = vadd.f32 %v2147_v34, %v182_v37  ;;  %v2316_v40 = vpop.f32.mrb[3].mxu0 }
 0x220   :  { %v2790_v41 = vpack.c.bf16 %v183_v39, %v180_v38 }
 0x222   :  { %317 = vrot.lane.b32.xlu1 %v2790_v41, %s2629_s2  ;;  %188 = vrot.lane.b32.xlu0 %v2790_v41, %s2630_s25 }
 0x226   :  { %315 = vrot.lane.b32.xlu1 %v2790_v41, %s2631_s3  ;;  %451 = vrot.lane.b32.xlu0 %v2790_v41, %s2632_s27 }
 0x22a   :  { %453 = vrot.lane.b32.xlu1 %v2790_v41, %s2633_s28  ;;  %587 = vrot.lane.b32.xlu0 %v2790_v41, %s3225_s5 }
 0x22e   :  { %589 = vrot.lane.b32.xlu1 %v2790_v41, %s2635_s29 }
 0x294   :  { %v189_v42 = vpop.permute.xlu0 %188  ;;  %v318_v44 = vpop.permute.xlu1 %317 }
 0x295   :  { %v195_v43 = vsel %vm190_vm2, %v189_v42, 0  ;;  %v323_v46 = vsel %vm190_vm2, %v318_v44, 0 }
 0x296   :  { %2318 = vmatpush3.bf16.xpose.msra.mxu1 %v195_v43 }
 0x297   :  { %2329 = vmatprep.subr.bf16.mxu1 %v2627_v15 }
 0x298   :  { %v316_v45 = vpop.permute.xlu1 %315  ;;  %v452_v50 = vpop.permute.xlu0 %451 }
 0x29c   :  { %v454_v47 = vpop.permute.xlu1 %453  ;;  %v588_v52 = vpop.permute.xlu0 %587 }
 0x29d   :  { %2320 = vmatmul.mubr.msk.bf16.vlgmr.msra.gmra.mrb[0].mxu1 %vm190_vm2, %v2790_v41  ;;  %v459_v48 = vsel %vm190_vm2, %v454_v47, 0 }
 0x29e   :  { %2330 = vmatpush3.bf16.xpose.msra.mxu1 %v323_v46  ;;  %2331 = vmatprep.mubr.msk.bf16.mxu1 %vm2628_vm1, %v2627_v15 }
 0x29f   :  { %2341 = vmatprep.subr.bf16.mxu1 %v2627_v15 }
 0x2a0   :  { %v590_v49 = vpop.permute.xlu1 %589 }
 0x2a1   :  { %v595_v51 = vsel %vm190_vm2, %v590_v49, 0 }
 0x2a5   :  { %2332 = vmatmul.mubr.msk.bf16.vlgmr.msra.gmra.mrb[4].mxu1 %vm190_vm2, %v316_v45 }
 0x2a6   :  { %2342 = vmatpush3.bf16.xpose.msra.mxu1 %v459_v48  ;;  %2343 = vmatprep.mubr.msk.bf16.mxu1 %vm2628_vm1, %v2627_v15 }
 0x2a7   :  { %2353 = vmatprep.subr.bf16.mxu1 %v2627_v15 }
 0x2ad   :  { %2344 = vmatmul.mubr.msk.bf16.vlgmr.msra.gmra.mrb[8].mxu1 %vm190_vm2, %v452_v50 }
 0x2ae   :  { %2354 = vmatpush3.bf16.xpose.msra.mxu1 %v595_v51  ;;  %2355 = vmatprep.mubr.msk.bf16.mxu1 %vm2628_vm1, %v2627_v15 }
 0x2af   :  { %2365 = vmatprep.subr.bf16.mxu1 %v2627_v15 }
 0x2b5   :  { %2356 = vmatmul.mubr.msk.bf16.vlgmr.msra.gmra.mrb[12].mxu1 %vm190_vm2, %v588_v52 }
 0x2b6   :  { %2369 = vmatprep.mubr.msk.bf16.mxu1 %vm2628_vm1, %v2627_v15 }
 0x370   :  { %v231_v53 = vpop.f32.mrb[0].mxu1 }
 0x371   :  { %v238_v55 = vmul.f32 0.35355338, %v231_v53  ;;  %v2321_v56 = vpop.f32.mrb[1].mxu1 }
 0x372   :  { %v234_v57 = vpop.f32.mrb[2].mxu1 }
 0x373   :  { %v239_v59 = vmul.f32 0.35355338, %v234_v57  ;;  %v2322_v60 = vpop.f32.mrb[3].mxu1  ;;  %v240_v61 = vadd.f32 %v238_v55, %v2830_v54 }
 0x375   :  { %v243_v62 = vsel %vm242_vm3, %v240_v61, -inf  ;;  %v241_v63 = vadd.f32 %v239_v59, %v2835_v58 }
 0x376   :  { %244 = vmax.xlane.f32.xlu1 %v243_v62 }
 0x377   :  { %v246_v0 = vsel %vm242_vm3, %v241_v63, -inf }
 0x378   :  { %247 = vmax.xlane.f32.xlu0 %v246_v0  ;;  %v359_v1 = vpop.f32.mrb[4].mxu1 }
 0x379   :  { %v366_v2 = vmul.f32 0.35355338, %v359_v1  ;;  %v2333_v3 = vpop.f32.mrb[5].mxu1 }
 0x37a   :  { %v362_v4 = vpop.f32.mrb[6].mxu1 }
 0x37b   :  { %v367_v5 = vmul.f32 0.35355338, %v362_v4  ;;  %v2334_v6 = vpop.f32.mrb[7].mxu1  ;;  %v368_v7 = vadd.f32 %v366_v2, %v2830_v54 }
 0x37d   :  { %v370_v8 = vsel %vm242_vm3, %v368_v7, -inf  ;;  %v369_v9 = vadd.f32 %v367_v5, %v2835_v58 }
 0x37e   :  { %371 = vmax.xlane.f32.xlu0 %v370_v8 }
 0x37f   :  { %v373_v13 = vsel %vm242_vm3, %v369_v9, -inf }
 0x380   :  { %v495_v10 = vpop.f32.mrb[8].mxu1 }
 0x381   :  { %v502_v11 = vmul.f32 0.35355338, %v495_v10  ;;  %v2345_v12 = vpop.f32.mrb[9].mxu1 }
 0x382   :  { %374 = vmax.xlane.f32.xlu0 %v373_v13  ;;  %v498_v14 = vpop.f32.mrb[10].mxu1 }
 0x383   :  { %v503_v16 = vmul.f32 0.35355338, %v498_v14  ;;  %v2346_v17 = vpop.f32.mrb[11].mxu1  ;;  %v504_v18 = vadd.f32 %v502_v11, %v2830_v54 }
 0x385   :  { %v506_v19 = vsel %vm242_vm3, %v504_v18, -inf  ;;  %v505_v20 = vadd.f32 %v503_v16, %v2835_v58 }
 0x386   :  { %507 = vmax.xlane.f32.xlu1 %v506_v19 }
 0x387   :  { %v509_v21 = vsel %vm242_vm3, %v505_v20, -inf }
 0x388   :  { %510 = vmax.xlane.f32.xlu0 %v509_v21  ;;  %v631_v22 = vpop.f32.mrb[12].mxu1 }
 0x389   :  { %v638_v23 = vmul.f32 0.35355338, %v631_v22  ;;  %v2357_v24 = vpop.f32.mrb[13].mxu1 }
 0x38a   :  { %v634_v25 = vpop.f32.mrb[14].mxu1 }
 0x38b   :  { %v639_v26 = vmul.f32 0.35355338, %v634_v25  ;;  %v2358_v27 = vpop.f32.mrb[15].mxu1  ;;  %v640_v28 = vadd.f32 %v638_v23, %v2830_v54 }
 0x38d   :  { %v642_v29 = vsel %vm242_vm3, %v640_v28, -inf  ;;  %v641_v30 = vadd.f32 %v639_v26, %v2835_v58 }
 0x38e   :  { %643 = vmax.xlane.f32.xlu1 %v642_v29 }
 0x38f   :  { %v645_v33 = vsel %vm242_vm3, %v641_v30, -inf }
 0x390   :  { %646 = vmax.xlane.f32.xlu0 %v645_v33 }
 0x39f   :  { %266 = vrot.lane.b32.xlu1 %v2790_v41, %s3216_s1 }
 0x403   :  { %v245_v34 = vpop.xlane.xlu1 %244 }
 0x404   :  { %v249_v35 = vsub.f32 %v240_v61, %v245_v34 }
 0x405   :  { %v248_v36 = vpop.xlane.xlu0 %247 }
 0x406   :  { %v251_v37 = vmul.f32 1.442695, %v249_v35  ;;  %v250_v38 = vsub.f32 %v241_v63, %v248_v36 }
 0x408   :  { %2537 = vpow2.f32 %v251_v37  ;;  %v253_v39 = vmul.f32 1.442695, %v250_v38 }
 0x40a   :  { %2539 = vpow2.f32 %v253_v39 }
 0x40b   :  { %v372_v40 = vpop.xlane.xlu0 %371 }
 0x40c   :  { %v376_v42 = vsub.f32 %v368_v7, %v372_v40 }
 0x40e   :  { %v378_v43 = vmul.f32 1.442695, %v376_v42 }
 0x40f   :  { %v375_v44 = vpop.xlane.xlu0 %374 }
 0x410   :  { %2541 = vpow2.f32 %v378_v43  ;;  %v377_v45 = vsub.f32 %v369_v9, %v375_v44 }
 0x412   :  { %v2538_v46 = vpop.eup %2537  ;;  %v380_v47 = vmul.f32 1.442695, %v377_v45 }
 0x413   :  { %v508_v48 = vpop.xlane.xlu1 %507  ;;  %v255_v49 = vsel %vm242_vm3, %v2538_v46, 0.0 }
 0x414   :  { %v2540_v50 = vpop.eup %2539  ;;  %2543 = vpow2.f32 %v380_v47  ;;  %v512_v51 = vsub.f32 %v504_v18, %v508_v48  ;;  %256 = vadd.xlane.f32.xlu1 %v255_v49 }
 0x415   :  { %v511_v52 = vpop.xlane.xlu0 %510  ;;  %v258_v53 = vsel %vm242_vm3, %v2540_v50, 0.0 }
 0x416   :  { %v514_v55 = vmul.f32 1.442695, %v512_v51  ;;  %v513_v56 = vsub.f32 %v505_v20, %v511_v52  ;;  %259 = vadd.xlane.f32.xlu0 %v258_v53 }
 0x418   :  { %2545 = vpow2.f32 %v514_v55  ;;  %v516_v57 = vmul.f32 1.442695, %v513_v56 }
 0x41a   :  { %v2542_v59 = vpop.eup %2541  ;;  %2547 = vpow2.f32 %v516_v57  ;;  %v2511_v57 = vld [vmem:[%s3197_s6] sm:$0xff]  }
 0x41b   :  { %v644_v60 = vpop.xlane.xlu1 %643  ;;  %v382_v61 = vsel %vm242_vm3, %v2542_v59, 0.0  ;;  %2366 = vmatpush3.bf16.msra.mxu1 %v2511_v57  ;;  %v2517_v57 = vld [vmem:[%s3202_s12 + $0x10] sm:$0xff]  }
 0x41c   :  { %v648_v62 = vsub.f32 %v640_v28, %v644_v60  ;;  %383 = vadd.xlane.f32.xlu1 %v382_v61  ;;  %v2512_v61 = vld [vmem:[%s3197_s6 + $0x8] sm:$0xff]   ;;  %2367 = vmatprep.subr.bf16.mxu1 %v2627_v15 }
 0x41d   :  { %v647_v63 = vpop.xlane.xlu0 %646 }
 0x41e   :  { %v2544_v0 = vpop.eup %2543  ;;  %v650_v1 = vmul.f32 1.442695, %v648_v62  ;;  %v649_v2 = vsub.f32 %v641_v30, %v647_v63 }
 0x41f   :  { %v267_v3 = vpop.permute.xlu1 %266  ;;  %v385_v4 = vsel %vm242_vm3, %v2544_v0, 0.0  ;;  %2368 = vmatpush3.bf16.msra.mxu1 %v2512_v61 }
 0x420   :  { %2549 = vpow2.f32 %v650_v1  ;;  %v652_v5 = vmul.f32 1.442695, %v649_v2  ;;  %2324 = vmatpush3.bf16.msra.mxu0 %v267_v3  ;;  %386 = vadd.xlane.f32.xlu0 %v385_v4 }
 0x421   :  { %2335 = vmatprep.subr.bf16.mxu0 %v2627_v15  ;;  %2381 = vmatprep.subr.bf16.mxu1 %v2627_v15 }
 0x422   :  { %v2546_v6 = vpop.eup %2545  ;;  %2551 = vpow2.f32 %v652_v5 }
 0x423   :  { %v518_v7 = vsel %vm242_vm3, %v2546_v6, 0.0 }
 0x424   :  { %v2548_v8 = vpop.eup %2547  ;;  %519 = vadd.xlane.f32.xlu1 %v518_v7 }
 0x425   :  { %v521_v9 = vsel %vm242_vm3, %v2548_v8, 0.0 }
 0x426   :  { %522 = vadd.xlane.f32.xlu0 %v521_v9 }
 0x42a   :  { %v2550_v10 = vpop.eup %2549 }
 0x42b   :  { %v654_v11 = vsel %vm242_vm3, %v2550_v10, 0.0 }
 0x42c   :  { %v2552_v12 = vpop.eup %2551  ;;  %655 = vadd.xlane.f32.xlu1 %v654_v11 }
 0x42d   :  { %v657_v13 = vsel %vm242_vm3, %v2552_v12, 0.0 }
 0x42e   :  { %658 = vadd.xlane.f32.xlu0 %v657_v13  ;;  %v2159_v13 = vld [vmem:[%s3198_s7] ss:$0 sm:$0xff] }
 0x43d   :  { %529 = vrot.lane.b32.xlu1 %v2790_v41, %s3217_s22 }
 0x441   :  { %665 = vrot.lane.b32.xlu1 %v2790_v41, %s3215_s23  ;;  %s3220_s23 = smov 16  }
 0x444   :  { %393 = vrot.lane.b32.xlu0 %v2790_v41, %s3224_s30 }
 0x4a1   :  { %v257_v14 = vpop.xlane.xlu1 %256 }
 0x4a2   :  { %2553 = vrcp.f32 %v257_v14 }
 0x4a3   :  { %v260_v16 = vpop.xlane.xlu0 %259 }
 0x4a4   :  { %2555 = vrcp.f32 %v260_v16 }
 0x4a9   :  { %v384_v22 = vpop.xlane.xlu1 %383 }
 0x4ac   :  { %v2554_v17 = vpop.eup %2553 }
 0x4ad   :  { %v387_v18 = vpop.xlane.xlu0 %386  ;;  %v263_v20 = vmul.f32 %v2554_v17, %v2538_v46 }
 0x4ae   :  { %v2556_v19 = vpop.eup %2555  ;;  %2557 = vrcp.f32 %v387_v18 }
 0x4af   :  { %v264_v21 = vmul.f32 %v2556_v19, %v2540_v50  ;;  %2559 = vrcp.f32 %v384_v22 }
 0x4b1   :  { %v265_v23 = vpack.c.bf16 %v264_v21, %v263_v20  ;;  %v520_v41 = vpop.xlane.xlu1 %519 }
 0x4b3   :  { %2326 = vmatmul.mubr.msk.bf16.vlgmr.msra.gmra.mrb[4].mxu0 %vm242_vm3, %v265_v23  ;;  %v523_v24 = vpop.xlane.xlu0 %522 }
 0x4b4   :  { %2337 = vmatprep.mubr.msk.bf16.mxu0 %vm2628_vm1, %v2627_v15  ;;  %2561 = vrcp.f32 %v523_v24 }
 0x4b5   :  { %2563 = vrcp.f32 %v520_v41 }
 0x4b8   :  { %v2558_v25 = vpop.eup %2557 }
 0x4b9   :  { %v2560_v27 = vpop.eup %2559  ;;  %v391_v28 = vmul.f32 %v2558_v25, %v2544_v0  ;;  %v656_v29 = vpop.xlane.xlu1 %655 }
 0x4ba   :  { %v390_v30 = vmul.f32 %v2560_v27, %v2542_v59 }
 0x4bb   :  { %v659_v26 = vpop.xlane.xlu0 %658 }
 0x4bc   :  { %2565 = vrcp.f32 %v659_v26  ;;  %v392_v34 = vpack.c.bf16 %v391_v28, %v390_v30 }
 0x4bd   :  { %2567 = vrcp.f32 %v656_v29  ;;  %v530_v36 = vpop.permute.xlu1 %529 }
 0x4be   :  { %v2562_v35 = vpop.eup %2561 }
 0x4bf   :  { %v394_v33 = vpop.permute.xlu0 %393  ;;  %v2564_v37 = vpop.eup %2563  ;;  %v527_v38 = vmul.f32 %v2562_v35, %v2548_v8  ;;  %v2514_v35 = vld [vmem:[%s3199_s10 + $0x8] sm:$0xff]  }
 0x4c0   :  { %2336 = vmatpush3.bf16.msra.mxu0 %v394_v33  ;;  %v526_v39 = vmul.f32 %v2564_v37, %v2546_v6 }
 0x4c1   :  { %2347 = vmatprep.subr.bf16.mxu0 %v2627_v15  ;;  %v666_v43 = vpop.permute.xlu1 %665 }
 0x4c2   :  { %v528_v40 = vpack.c.bf16 %v527_v38, %v526_v39 }
 0x4c3   :  { %2338 = vmatmul.mubr.msk.bf16.vlgmr.msra.gmra.mrb[8].mxu0 %vm242_vm3, %v392_v34 }
 0x4c4   :  { %2348 = vmatpush3.bf16.msra.mxu0 %v530_v36  ;;  %2349 = vmatprep.mubr.msk.bf16.mxu0 %vm2628_vm1, %v2627_v15 }
 0x4c5   :  { %2359 = vmatprep.subr.bf16.mxu0 %v2627_v15 }
 0x4c6   :  { %v2566_v42 = vpop.eup %2565 }
 0x4c7   :  { %v2568_v44 = vpop.eup %2567  ;;  %v663_v45 = vmul.f32 %v2566_v42, %v2552_v12 }
 0x4c8   :  { %v662_v46 = vmul.f32 %v2568_v44, %v2550_v10 }
 0x4ca   :  { %v664_v47 = vpack.c.bf16 %v663_v45, %v662_v46  ;;  %v2163_v45 = vld [vmem:[%s3200_s8] ss:$0 sm:$0xff] }
 0x4cb   :  { %2350 = vmatmul.mubr.msk.bf16.vlgmr.msra.gmra.mrb[12].mxu0 %vm242_vm3, %v528_v40 }
 0x4cc   :  { %2360 = vmatpush3.bf16.msra.mxu0 %v666_v43  ;;  %2361 = vmatprep.mubr.msk.bf16.mxu0 %vm2628_vm1, %v2627_v15 }
 0x4cd   :  { %2373 = vmatprep.subr.bf16.mxu0 %v2627_v15 }
 0x4d3   :  { %2362 = vmatmul.mubr.msk.bf16.vlgmr.msra.gmra.mrb[16].mxu0 %vm242_vm3, %v664_v47 }
 0x4d4   :  { %2377 = vmatprep.mubr.msk.bf16.mxu0 %vm2628_vm1, %v2627_v15 }
 0x586   :  { %v306_v48 = vpop.f32.mrb[4].mxu0 }
 0x587   :  { %313 = vst.msk [vmem:[#allocation2] sm:$0xff] %vm190_vm2, %v306_v48  ;;  %v2327_v49 = vpop.f32.mrb[5].mxu0 }
 0x588   :  { %v309_v50 = vpop.f32.mrb[6].mxu0  ;;  %v2164_v49 = vld [vmem:[%s3201_s9] ss:$0 sm:$0xff] }
 0x589   :  { %314 = vst.msk [vmem:[#allocation2 + $0x8] sm:$0xff] %vm190_vm2, %v309_v50  ;;  %v2328_v51 = vpop.f32.mrb[7].mxu0 }
 0x596   :  { %v433_v52 = vpop.f32.mrb[8].mxu0 }
 0x597   :  { %442 = vrot.lane.b32.xlu1 %v433_v52, %s3222_s0  ;;  %v2339_v53 = vpop.f32.mrb[9].mxu0 }
 0x598   :  { %v436_v55 = vpop.f32.mrb[10].mxu0 }
 0x599   :  { %444 = vrot.lane.b32.xlu0 %v436_v55, %s3222_s0  ;;  %v2340_v56 = vpop.f32.mrb[11].mxu0  ;;  %v2515_v55 = vld [vmem:[%s3202_s12] sm:$0xff]   ;;  %s3243_s0 = smov 24  }
 0x59a   :  { %v2516_v56 = vld [vmem:[%s3202_s12 + $0x8] sm:$0xff]  }
 0x59e   :  { %v569_v59 = vpop.f32.mrb[12].mxu0 }
 0x59f   :  { %578 = vrot.lane.b32.xlu1 %v569_v59, %s3220_s23  ;;  %v2351_v60 = vpop.f32.mrb[13].mxu0  ;;  %v2518_v59 = vld [vmem:[%s3202_s12 + $0x18] sm:$0xff]  }
 0x5a0   :  { %v572_v62 = vpop.f32.mrb[14].mxu0  ;;  %v2165_v60 = vld [vmem:[%s3203_s11] ss:$0 sm:$0xff] }
 0x5a1   :  { %580 = vrot.lane.b32.xlu0 %v572_v62, %s3220_s23  ;;  %v2352_v63 = vpop.f32.mrb[15].mxu0 }
 0x5a6   :  { %v705_v0 = vpop.f32.mrb[16].mxu0 }
 0x5a7   :  { %714 = vrot.lane.b32.xlu1 %v705_v0, %s3218_s21  ;;  %v2363_v1 = vpop.f32.mrb[17].mxu0 }
 0x5a8   :  { %v708_v2 = vpop.f32.mrb[18].mxu0 }
 0x5a9   :  { %716 = vrot.lane.b32.xlu0 %v708_v2, %s3218_s21  ;;  %v2364_v3 = vpop.f32.mrb[19].mxu0 }
 0x609   :  { %v443_v4 = vpop.permute.xlu1 %442 }
 0x60a   :  { %449 = vst.msk [vmem:[#allocation2] sm:$0xff] %vm448_vm4, %v443_v4 }
 0x60b   :  { %v445_v5 = vpop.permute.xlu0 %444 }
 0x60c   :  { %450 = vst.msk [vmem:[#allocation2 + $0x8] sm:$0xff] %vm448_vm4, %v445_v5 }
 0x611   :  { %v579_v6 = vpop.permute.xlu1 %578 }
 0x612   :  { %585 = vst.msk [vmem:[#allocation2] sm:$0xff] %vm584_vm5, %v579_v6 }
 0x613   :  { %v581_v7 = vpop.permute.xlu0 %580 }
 0x614   :  { %586 = vst.msk [vmem:[#allocation2 + $0x8] sm:$0xff] %vm584_vm5, %v581_v7 }
 0x619   :  { %v715_v8 = vpop.permute.xlu1 %714 }
 0x61a   :  { %721 = vst.msk [vmem:[#allocation2] sm:$0xff] %vm720_vm6, %v715_v8 }
 0x61b   :  { %v717_v9 = vpop.permute.xlu0 %716 }
 0x61c   :  { %722 = vst.msk [vmem:[#allocation2 + $0x8] sm:$0xff] %vm720_vm6, %v717_v9 }
 0x621   :  { %v723_v10 = vld [vmem:[#allocation2] sm:$0xff] }
 0x623   :  { %v724_v11 = vld [vmem:[#allocation2 + $0x8] sm:$0xff] }
 0x624   :  { %v729_v12 = vpack.c.bf16 %v724_v11, %v723_v10 }
 0x626   :  { %2370 = vmatmul.mubr.msk.bf16.vlgmr.msra.gmra.mrb[16].mxu1 %vm72_vm0, %v729_v12 }
 0x627   :  { %2389 = vmatprep.mubr.msk.bf16.mxu1 %vm2628_vm1, %v2627_v15  ;;  %2382 = vmatpush3.bf16.msra.mxu1 %v2515_v55 }
 0x628   :  { %2383 = vmatprep.subr.bf16.mxu1 %v2627_v15 }
 0x62b   :  { %2384 = vmatpush3.bf16.msra.mxu1 %v2516_v56 }
 0x62c   :  { %2385 = vmatprep.subr.bf16.mxu1 %v2627_v15 }
 0x62f   :  { %2386 = vmatpush3.bf16.msra.mxu1 %v2517_v57 }
 0x630   :  { %2387 = vmatprep.subr.bf16.mxu1 %v2627_v15 }
 0x633   :  { %2388 = vmatpush3.bf16.msra.mxu1 %v2518_v59 }
 0x634   :  { %2407 = vmatprep.subr.bf16.mxu1 %v2627_v15 }
 0x6f9   :  { %v786_v14 = vpop.f32.mrb[16].mxu1 }
 0x6fa   :  { %v787_v16 = vadd.f32 %v2159_v13, %v786_v14  ;;  %v2371_v17 = vpop.f32.mrb[17].mxu1 }
 0x6fb   :  { %v789_v18 = vpop.f32.mrb[18].mxu1 }
 0x6fc   :  { %v790_v19 = vadd.f32 %v2159_v13, %v789_v18  ;;  %v2372_v20 = vpop.f32.mrb[19].mxu1  ;;  %v793_v21 = vadd.f32 %v787_v16, %v2778_v31 }
 0x6fe   :  { %v797_v22 = vsel %vm72_vm0, %v793_v21, 0.0  ;;  %v794_v23 = vadd.f32 %v790_v19, %v2780_v32  ;;  %v2513_v32 = vld [vmem:[%s3199_s10] sm:$0xff]  }
 0x6ff   :  { %798 = vadd.xlane.f32.xlu1 %v797_v22  ;;  %2374 = vmatpush3.bf16.msra.mxu0 %v2513_v32 }
 0x700   :  { %v800_v24 = vsel %vm72_vm0, %v794_v23, 0.0  ;;  %2375 = vmatprep.subr.bf16.mxu0 %v2627_v15 }
 0x701   :  { %801 = vadd.xlane.f32.xlu0 %v800_v24 }
 0x703   :  { %2376 = vmatpush3.bf16.msra.mxu0 %v2514_v35 }
 0x704   :  { %2393 = vmatprep.subr.bf16.mxu0 %v2627_v15 }
 0x78c   :  { %v799_v41 = vpop.xlane.xlu1 %798 }
 0x78d   :  { %v803_v25 = vmul.f32 0.03125, %v799_v41 }
 0x78e   :  { %v802_v26 = vpop.xlane.xlu0 %801 }
 0x78f   :  { %v805_v27 = vsub.f32 %v793_v21, %v803_v25  ;;  %v804_v28 = vmul.f32 0.03125, %v802_v26 }
 0x791   :  { %v806_v29 = vsub.f32 %v794_v23, %v804_v28  ;;  %v807_v30 = vmul.f32 %v805_v27, %v805_v27  ;;  %v2169_v23 = vld [vmem:[%s3204_s13] ss:$0 sm:$0xff] }
 0x793   :  { %v809_v33 = vsel %vm72_vm0, %v807_v30, 0.0  ;;  %v808_v34 = vmul.f32 %v806_v29, %v806_v29 }
 0x794   :  { %810 = vadd.xlane.f32.xlu0 %v809_v33 }
 0x795   :  { %v812_v31 = vsel %vm72_vm0, %v808_v34, 0.0 }
 0x798   :  { %813 = vadd.xlane.f32.xlu0 %v812_v31 }
 0x821   :  { %v811_v36 = vpop.xlane.xlu0 %810 }
 0x822   :  { %v815_v37 = vmul.f32 0.03125, %v811_v36 }
 0x824   :  { %v817_v38 = vadd.f32 1e-12, %v815_v37 }
 0x825   :  { %v814_v39 = vpop.xlane.xlu0 %813 }
 0x826   :  { %2569 = vrsqrt.f32 %v817_v38  ;;  %v816_v40 = vmul.f32 0.03125, %v814_v39 }
 0x828   :  { %v818_v42 = vadd.f32 1e-12, %v816_v40 }
 0x82a   :  { %2571 = vrsqrt.f32 %v818_v42 }
 0x830   :  { %v2570_v43 = vpop.eup %2569 }
 0x831   :  { %v821_v44 = vmul.f32 %v2570_v43, %v805_v27 }
 0x833   :  { %v829_v47 = vmul.f32 %v2163_v45, %v821_v44  ;;  %v2519_v44 = vld [vmem:[%s3232_s26 + $0x10] sm:$0xff]  }
 0x834   :  { %v2572_v46 = vpop.eup %2571 }
 0x835   :  { %v822_v48 = vmul.f32 %v2572_v46, %v806_v29  ;;  %v837_v51 = vadd.f32 %v2164_v49, %v829_v47 }
 0x837   :  { %v830_v50 = vmul.f32 %v2163_v45, %v822_v48  ;;  %v2520_v45 = vld [vmem:[%s3232_s26 + $0x18] sm:$0xff]  }
 0x839   :  { %v838_v52 = vadd.f32 %v2164_v49, %v830_v50 }
 0x83b   :  { %v843_v53 = vpack.c.bf16 %v838_v52, %v837_v51 }
 0x83d   :  { %2378 = vmatmul.mubr.msk.bf16.vlgmr.msra.gmra.mrb[20].mxu0 %vm72_vm0, %v843_v53  ;;  %v2175_v53 = vld [vmem:[%s3205_s14] ss:$0 sm:$0xff] }
 0x83e   :  { %2397 = vmatprep.mubr.msk.bf16.mxu0 %vm2628_vm1, %v2627_v15  ;;  %2394 = vmatpush3.bf16.msra.mxu0 %v2519_v44 }
 0x83f   :  { %2395 = vmatprep.subr.bf16.mxu0 %v2627_v15 }
 0x842   :  { %2396 = vmatpush3.bf16.msra.mxu0 %v2520_v45 }
 0x843   :  { %2401 = vmatprep.subr.bf16.mxu0 %v2627_v15 }
 0x910   :  { %v900_v61 = vpop.f32.mrb[20].mxu0 }
 0x911   :  { %v901_v62 = vadd.f32 %v2165_v60, %v900_v61  ;;  %v2379_v63 = vpop.f32.mrb[21].mxu0 }
 0x912   :  { %v903_v0 = vpop.f32.mrb[22].mxu0 }
 0x913   :  { %v909_v1 = vmul.f32 0.044715, %v901_v62  ;;  %v904_v2 = vadd.f32 %v2165_v60, %v903_v0  ;;  %v2380_v3 = vpop.f32.mrb[23].mxu0  ;;  %v907_v17 = vmul.f32 0.5, %v901_v62  ;;  %v2176_v60 = vld [vmem:[%s3206_s15] ss:$0 sm:$0xff] }
 0x915   :  { %v911_v4 = vmul.f32 %v909_v1, %v901_v62  ;;  %v910_v5 = vmul.f32 0.044715, %v904_v2  ;;  %v908_v18 = vmul.f32 0.5, %v904_v2  ;;  %v2182_v1 = vld [vmem:[%s3235_s24 + $0x1] ss:$0 sm:$0xff]  ;;  %s3236_s24 = smov 104  }
 0x917   :  { %v913_v6 = vmul.f32 %v911_v4, %v901_v62  ;;  %v912_v7 = vmul.f32 %v910_v5, %v904_v2 }
 0x919   :  { %v915_v8 = vadd.f32 %v913_v6, %v901_v62  ;;  %v914_v9 = vmul.f32 %v912_v7, %v904_v2 }
 0x91b   :  { %v917_v10 = vmul.f32 0.7978846, %v915_v8  ;;  %v916_v11 = vadd.f32 %v914_v9, %v904_v2 }
 0x91d   :  { %2573 = vtanh.f32 %v917_v10  ;;  %v918_v12 = vmul.f32 0.7978846, %v916_v11 }
 0x91f   :  { %2575 = vtanh.f32 %v918_v12 }
 0x927   :  { %v2574_v13 = vpop.eup %2573 }
 0x928   :  { %v921_v14 = vadd.f32 1.0, %v2574_v13 }
 0x929   :  { %v2576_v16 = vpop.eup %2575 }
 0x92a   :  { %v922_v19 = vadd.f32 1.0, %v2576_v16  ;;  %v923_v20 = vmul.f32 %v921_v14, %v907_v17 }
 0x92c   :  { %v924_v21 = vmul.f32 %v922_v19, %v908_v18 }
 0x92e   :  { %v933_v22 = vpack.c.bf16 %v924_v21, %v923_v20 }
 0x930   :  { %2390 = vmatmul.mubr.msk.bf16.vlgmr.msra.gmra.mrb[20].mxu1 %vm965_vm7, %v933_v22 }
 0x931   :  { %2409 = vmatprep.mubr.msk.bf16.mxu1 %vm2628_vm1, %v2627_v15 }
 0xa03   :  { %v1003_v24 = vpop.f32.mrb[20].mxu1 }
 0xa04   :  { %v1004_v41 = vadd.f32 %v2169_v23, %v1003_v24  ;;  %v2391_v25 = vpop.f32.mrb[21].mxu1 }
 0xa05   :  { %v1006_v26 = vpop.f32.mrb[22].mxu1 }
 0xa06   :  { %v1007_v27 = vadd.f32 %v2169_v23, %v1006_v26  ;;  %v2392_v28 = vpop.f32.mrb[23].mxu1  ;;  %v1010_v29 = vadd.f32 %v1004_v41, %v837_v51 }
 0xa08   :  { %v1014_v30 = vsel %vm72_vm0, %v1010_v29, 0.0  ;;  %v1011_v33 = vadd.f32 %v1007_v27, %v838_v52 }
 0xa09   :  { %1015 = vadd.xlane.f32.xlu1 %v1014_v30 }
 0xa0a   :  { %v1017_v34 = vsel %vm72_vm0, %v1011_v33, 0.0 }
 0xa0b   :  { %1018 = vadd.xlane.f32.xlu0 %v1017_v34 }
 0xa96   :  { %v1016_v31 = vpop.xlane.xlu1 %1015 }
 0xa97   :  { %v1020_v32 = vmul.f32 0.03125, %v1016_v31 }
 0xa98   :  { %v1019_v35 = vpop.xlane.xlu0 %1018 }
 0xa99   :  { %v1022_v36 = vsub.f32 %v1010_v29, %v1020_v32  ;;  %v1021_v37 = vmul.f32 0.03125, %v1019_v35 }
 0xa9b   :  { %v1023_v38 = vsub.f32 %v1011_v33, %v1021_v37  ;;  %v1024_v39 = vmul.f32 %v1022_v36, %v1022_v36 }
 0xa9d   :  { %v1026_v40 = vsel %vm72_vm0, %v1024_v39, 0.0  ;;  %v1025_v42 = vmul.f32 %v1023_v38, %v1023_v38 }
 0xa9e   :  { %1027 = vadd.xlane.f32.xlu1 %v1026_v40 }
 0xa9f   :  { %v1029_v43 = vsel %vm72_vm0, %v1025_v42, 0.0 }
 0xaa0   :  { %1030 = vadd.xlane.f32.xlu0 %v1029_v43 }
 0xb2b   :  { %v1028_v46 = vpop.xlane.xlu1 %1027 }
 0xb2c   :  { %v1032_v47 = vmul.f32 0.03125, %v1028_v46 }
 0xb2d   :  { %v1031_v48 = vpop.xlane.xlu0 %1030 }
 0xb2e   :  { %v1034_v49 = vadd.f32 1e-12, %v1032_v47  ;;  %v1033_v50 = vmul.f32 0.03125, %v1031_v48 }
 0xb30   :  { %2577 = vrsqrt.f32 %v1034_v49  ;;  %v1035_v51 = vadd.f32 1e-12, %v1033_v50 }
 0xb32   :  { %2579 = vrsqrt.f32 %v1035_v51 }
 0xb3a   :  { %v2578_v52 = vpop.eup %2577 }
 0xb3b   :  { %v1038_v55 = vmul.f32 %v2578_v52, %v1022_v36 }
 0xb3c   :  { %v2580_v56 = vpop.eup %2579 }
 0xb3d   :  { %v1046_v57 = vmul.f32 %v2175_v53, %v1038_v55  ;;  %v1039_v59 = vmul.f32 %v2580_v56, %v1023_v38 }
 0xb3f   :  { %v1047_v61 = vmul.f32 %v2175_v53, %v1039_v59  ;;  %v2979_v62 = vadd.f32 %v2176_v60, %v1046_v57 }
 0xb41   :  { %v2981_v63 = vadd.f32 %v2176_v60, %v1047_v61 }
 0xb43   :  { %v1061_v0 = vpack.c.bf16 %v2981_v63, %v2979_v62 }
 0xb45   :  { %2398 = vmatmul.mubr.msk.bf16.vlgmr.msra.gmra.mrb[24].mxu0 %vm72_vm0, %v1061_v0 }
 0xb46   :  { %2403 = vmatprep.mubr.msk.bf16.mxu0 %vm2628_vm1, %v2627_v15 }
 0xc18   :  { %v1119_v2 = vpop.f32.mrb[24].mxu0 }
 0xc19   :  { %v2399_v3 = vpop.f32.mrb[25].mxu0  ;;  %v1120_v5 = vadd.f32 %v2182_v1, %v1119_v2 }
 0xc1a   :  { %v1122_v4 = vpop.f32.mrb[26].mxu0 }
 0xc1b   :  { %v1123_v6 = vadd.f32 %v2182_v1, %v1122_v4  ;;  %v2400_v7 = vpop.f32.mrb[27].mxu0 }
 0xc1d   :  { %v2991_v8 = vpack.c.bf16 %v1123_v6, %v1120_v5 }
 0xc1f   :  { %1255 = vrot.lane.b32.xlu0 %v2991_v8, %s2629_s2  ;;  %1128 = vrot.lane.b32.xlu1 %v2991_v8, %s2630_s25  ;;  %s3237_s2 = smov 56   ;;  %s3238_s25 = smov 48  }
 0xc23   :  { %1525 = vrot.lane.b32.xlu0 %v2991_v8, %s2635_s29  ;;  %1253 = vrot.lane.b32.xlu1 %v2991_v8, %s2631_s3  ;;  %s3239_s3 = smov 64   ;;  %s3242_s29 = smov 16  }
 0xc27   :  { %1390 = vrot.lane.b32.xlu1 %v2991_v8, %s2633_s28  ;;  %s3241_s28 = smov 8  }
 0xc2b   :  { %1388 = vrot.lane.b32.xlu1 %v2991_v8, %s2632_s27  ;;  %s3240_s27 = smov 40  }
 0xc2f   :  { %1523 = vrot.lane.b32.xlu1 %v2991_v8, %s3236_s24 }
 0xc91   :  { %v1129_v9 = vpop.permute.xlu1 %1128  ;;  %v1256_v11 = vpop.permute.xlu0 %1255 }
 0xc92   :  { %v1134_v10 = vsel %vm190_vm2, %v1129_v9, 0  ;;  %v1261_v13 = vsel %vm190_vm2, %v1256_v11, 0 }
 0xc93   :  { %2402 = vmatpush3.bf16.xpose.msra.mxu0 %v1134_v10 }
 0xc94   :  { %2413 = vmatprep.subr.bf16.mxu0 %v2627_v15 }
 0xc95   :  { %v1254_v12 = vpop.permute.xlu1 %1253  ;;  %v1526_v17 = vpop.permute.xlu0 %1525 }
 0xc96   :  { %v1531_v19 = vsel %vm190_vm2, %v1526_v17, 0 }
 0xc99   :  { %v1391_v14 = vpop.permute.xlu1 %1390 }
 0xc9a   :  { %2404 = vmatmul.mubr.msk.bf16.vlgmr.msra.gmra.mrb[28].mxu0 %vm190_vm2, %v2991_v8  ;;  %v1396_v16 = vsel %vm190_vm2, %v1391_v14, 0 }
 0xc9b   :  { %2414 = vmatpush3.bf16.xpose.msra.mxu0 %v1261_v13  ;;  %2415 = vmatprep.mubr.msk.bf16.mxu0 %vm2628_vm1, %v2627_v15 }
 0xc9c   :  { %2425 = vmatprep.subr.bf16.mxu0 %v2627_v15 }
 0xc9d   :  { %v1389_v18 = vpop.permute.xlu1 %1388 }
 0xca1   :  { %v1524_v20 = vpop.permute.xlu1 %1523 }
 0xca2   :  { %2416 = vmatmul.mubr.msk.bf16.vlgmr.msra.gmra.mrb[32].mxu0 %vm190_vm2, %v1254_v12 }
 0xca3   :  { %2426 = vmatpush3.bf16.xpose.msra.mxu0 %v1396_v16  ;;  %2427 = vmatprep.mubr.msk.bf16.mxu0 %vm2628_vm1, %v2627_v15 }
 0xca4   :  { %2437 = vmatprep.subr.bf16.mxu0 %v2627_v15 }
 0xcaa   :  { %2428 = vmatmul.mubr.msk.bf16.vlgmr.msra.gmra.mrb[36].mxu0 %vm190_vm2, %v1389_v18 }
 0xcab   :  { %2438 = vmatpush3.bf16.xpose.msra.mxu0 %v1531_v19  ;;  %2439 = vmatprep.mubr.msk.bf16.mxu0 %vm2628_vm1, %v2627_v15 }
 0xcac   :  { %2449 = vmatprep.subr.bf16.mxu0 %v2627_v15 }
 0xcb2   :  { %2440 = vmatmul.mubr.msk.bf16.vlgmr.msra.gmra.mrb[40].mxu0 %vm190_vm2, %v1524_v20 }
 0xcb3   :  { %2453 = vmatprep.mubr.msk.bf16.mxu0 %vm2628_vm1, %v2627_v15 }
 0xd6d   :  { %v1170_v21 = vpop.f32.mrb[28].mxu0 }
 0xd6e   :  { %v1177_v22 = vmul.f32 0.35355338, %v1170_v21  ;;  %v2405_v23 = vpop.f32.mrb[29].mxu0 }
 0xd6f   :  { %v1173_v24 = vpop.f32.mrb[30].mxu0 }
 0xd70   :  { %v1178_v41 = vmul.f32 0.35355338, %v1173_v24  ;;  %v2406_v25 = vpop.f32.mrb[31].mxu0  ;;  %v1179_v26 = vadd.f32 %v1177_v22, %v2830_v54 }
 0xd72   :  { %v1181_v27 = vsel %vm242_vm3, %v1179_v26, -inf  ;;  %v1180_v28 = vadd.f32 %v1178_v41, %v2835_v58 }
 0xd73   :  { %1182 = vmax.xlane.f32.xlu0 %v1181_v27 }
 0xd74   :  { %v1184_v29 = vsel %vm242_vm3, %v1180_v28, -inf }
 0xd75   :  { %1185 = vmax.xlane.f32.xlu1 %v1184_v29  ;;  %v1297_v30 = vpop.f32.mrb[32].mxu0 }
 0xd76   :  { %v1304_v33 = vmul.f32 0.35355338, %v1297_v30  ;;  %v2417_v34 = vpop.f32.mrb[33].mxu0 }
 0xd77   :  { %v1300_v31 = vpop.f32.mrb[34].mxu0 }
 0xd78   :  { %v1305_v32 = vmul.f32 0.35355338, %v1300_v31  ;;  %v2418_v35 = vpop.f32.mrb[35].mxu0  ;;  %v1306_v36 = vadd.f32 %v1304_v33, %v2830_v54 }
 0xd7a   :  { %v1308_v37 = vsel %vm242_vm3, %v1306_v36, -inf  ;;  %v1307_v38 = vadd.f32 %v1305_v32, %v2835_v58 }
 0xd7b   :  { %1309 = vmax.xlane.f32.xlu0 %v1308_v37 }
 0xd7c   :  { %v1311_v43 = vsel %vm242_vm3, %v1307_v38, -inf }
 0xd7d   :  { %v1432_v39 = vpop.f32.mrb[36].mxu0 }
 0xd7e   :  { %v1439_v40 = vmul.f32 0.35355338, %v1432_v39  ;;  %v2429_v42 = vpop.f32.mrb[37].mxu0 }
 0xd7f   :  { %1312 = vmax.xlane.f32.xlu0 %v1311_v43  ;;  %v1435_v44 = vpop.f32.mrb[38].mxu0 }
 0xd80   :  { %v1440_v45 = vmul.f32 0.35355338, %v1435_v44  ;;  %v2430_v46 = vpop.f32.mrb[39].mxu0  ;;  %v1441_v47 = vadd.f32 %v1439_v40, %v2830_v54 }
 0xd82   :  { %v1443_v48 = vsel %vm242_vm3, %v1441_v47, -inf  ;;  %v1442_v49 = vadd.f32 %v1440_v45, %v2835_v58 }
 0xd83   :  { %1444 = vmax.xlane.f32.xlu0 %v1443_v48 }
 0xd84   :  { %v1446_v50 = vsel %vm242_vm3, %v1442_v49, -inf }
 0xd85   :  { %1447 = vmax.xlane.f32.xlu1 %v1446_v50  ;;  %v1567_v51 = vpop.f32.mrb[40].mxu0 }
 0xd86   :  { %v1574_v52 = vmul.f32 0.35355338, %v1567_v51  ;;  %v2441_v53 = vpop.f32.mrb[41].mxu0 }
 0xd87   :  { %v1570_v55 = vpop.f32.mrb[42].mxu0 }
 0xd88   :  { %v1575_v56 = vmul.f32 0.35355338, %v1570_v55  ;;  %v2442_v57 = vpop.f32.mrb[43].mxu0  ;;  %v1576_v59 = vadd.f32 %v1574_v52, %v2830_v54 }
 0xd8a   :  { %v1578_v60 = vsel %vm242_vm3, %v1576_v59, -inf  ;;  %v1577_v61 = vadd.f32 %v1575_v56, %v2835_v58 }
 0xd8b   :  { %1579 = vmax.xlane.f32.xlu0 %v1578_v60 }
 0xd8c   :  { %v1581_v0 = vsel %vm242_vm3, %v1577_v61, -inf }
 0xd8d   :  { %1582 = vmax.xlane.f32.xlu1 %v1581_v0 }
 0xe00   :  { %v1183_v1 = vpop.xlane.xlu0 %1182 }
 0xe01   :  { %v1187_v2 = vsub.f32 %v1179_v26, %v1183_v1 }
 0xe02   :  { %v1186_v3 = vpop.xlane.xlu1 %1185 }
 0xe03   :  { %v1189_v4 = vmul.f32 1.442695, %v1187_v2  ;;  %v1188_v5 = vsub.f32 %v1180_v28, %v1186_v3 }
 0xe05   :  { %2581 = vpow2.f32 %v1189_v4  ;;  %v1191_v6 = vmul.f32 1.442695, %v1188_v5 }
 0xe07   :  { %2583 = vpow2.f32 %v1191_v6 }
 0xe08   :  { %v1310_v7 = vpop.xlane.xlu0 %1309 }
 0xe09   :  { %v1314_v9 = vsub.f32 %v1306_v36, %v1310_v7 }
 0xe0b   :  { %v1316_v10 = vmul.f32 1.442695, %v1314_v9 }
 0xe0c   :  { %v1313_v54 = vpop.xlane.xlu0 %1312 }
 0xe0d   :  { %2585 = vpow2.f32 %v1316_v10  ;;  %v1315_v11 = vsub.f32 %v1307_v38, %v1313_v54 }
 0xe0f   :  { %v2582_v12 = vpop.eup %2581  ;;  %v1318_v58 = vmul.f32 1.442695, %v1315_v11 }
 0xe10   :  { %v1445_v13 = vpop.xlane.xlu0 %1444  ;;  %v1193_v14 = vsel %vm242_vm3, %v2582_v12, 0.0 }
 0xe11   :  { %v2584_v16 = vpop.eup %2583  ;;  %2587 = vpow2.f32 %v1318_v58  ;;  %v1449_v17 = vsub.f32 %v1441_v47, %v1445_v13  ;;  %1194 = vadd.xlane.f32.xlu0 %v1193_v14 }
 0xe12   :  { %v1448_v18 = vpop.xlane.xlu1 %1447  ;;  %v1196_v19 = vsel %vm242_vm3, %v2584_v16, 0.0 }
 0xe13   :  { %v1451_v20 = vmul.f32 1.442695, %v1449_v17  ;;  %v1450_v21 = vsub.f32 %v1442_v49, %v1448_v18  ;;  %1197 = vadd.xlane.f32.xlu1 %v1196_v19 }
 0xe15   :  { %2589 = vpow2.f32 %v1451_v20  ;;  %v1453_v22 = vmul.f32 1.442695, %v1450_v21 }
 0xe17   :  { %v2586_v23 = vpop.eup %2585  ;;  %2591 = vpow2.f32 %v1453_v22 }
 0xe18   :  { %v1580_v24 = vpop.xlane.xlu0 %1579  ;;  %v1320_v41 = vsel %vm242_vm3, %v2586_v23, 0.0 }
 0xe19   :  { %v1584_v25 = vsub.f32 %v1576_v59, %v1580_v24  ;;  %1321 = vadd.xlane.f32.xlu0 %v1320_v41  ;;  %v2521_v24 = vld [vmem:[%s3197_s6 + $0x10] sm:$0xff]   ;;  %v2522_v41 = vld [vmem:[%s3197_s6 + $0x18] sm:$0xff]  }
 0xe1a   :  { %v1583_v35 = vpop.xlane.xlu1 %1582  ;;  %2450 = vmatpush3.bf16.msra.mxu0 %v2521_v24 }
 0xe1b   :  { %v2588_v26 = vpop.eup %2587  ;;  %v1586_v27 = vmul.f32 1.442695, %v1584_v25  ;;  %v1585_v36 = vsub.f32 %v1577_v61, %v1583_v35  ;;  %2451 = vmatprep.subr.bf16.mxu0 %v2627_v15 }
 0xe1c   :  { %v1323_v28 = vsel %vm242_vm3, %v2588_v26, 0.0 }
 0xe1d   :  { %2593 = vpow2.f32 %v1586_v27  ;;  %1324 = vadd.xlane.f32.xlu1 %v1323_v28  ;;  %v1588_v37 = vmul.f32 1.442695, %v1585_v36 }
 0xe1e   :  { %2452 = vmatpush3.bf16.msra.mxu0 %v2522_v41 }
 0xe1f   :  { %v2590_v29 = vpop.eup %2589  ;;  %2595 = vpow2.f32 %v1588_v37  ;;  %2465 = vmatprep.subr.bf16.mxu0 %v2627_v15 }
 0xe20   :  { %v1455_v30 = vsel %vm242_vm3, %v2590_v29, 0.0 }
 0xe21   :  { %v2592_v33 = vpop.eup %2591  ;;  %1456 = vadd.xlane.f32.xlu0 %v1455_v30 }
 0xe22   :  { %v1458_v34 = vsel %vm242_vm3, %v2592_v33, 0.0 }
 0xe23   :  { %1459 = vadd.xlane.f32.xlu1 %v1458_v34 }
 0xe27   :  { %v3050_v31 = vpop.eup %2593 }
 0xe28   :  { %v1590_v32 = vsel %vm242_vm3, %v3050_v31, 0.0 }
 0xe29   :  { %1591 = vadd.xlane.f32.xlu0 %v1590_v32  ;;  %v2596_v38 = vpop.eup %2595 }
 0xe2a   :  { %v1593_v39 = vsel %vm242_vm3, %v2596_v38, 0.0 }
 0xe34   :  { %1331 = vrot.lane.b32.xlu1 %v2991_v8, %s3237_s2 }
 0xe38   :  { %1466 = vrot.lane.b32.xlu1 %v2991_v8, %s3238_s25 }
 0xe3f   :  { %1204 = vrot.lane.b32.xlu0 %v2991_v8, %s3239_s3 }
 0xe5c   :  { %1594 = vadd.xlane.f32.xlu1 %v1593_v39 }
 0xe6d   :  { %1601 = vrot.lane.b32.xlu1 %v2991_v8, %s3240_s27 }
 0xe9e   :  { %v1195_v42 = vpop.xlane.xlu0 %1194 }
 0xea0   :  { %v1198_v40 = vpop.xlane.xlu1 %1197 }
 0xea1   :  { %2597 = vrcp.f32 %v1198_v40 }
 0xea2   :  { %2599 = vrcp.f32 %v1195_v42 }
 0xea6   :  { %v1322_v43 = vpop.xlane.xlu0 %1321 }
 0xeaa   :  { %v1325_v44 = vpop.xlane.xlu1 %1324 }
 0xeab   :  { %2601 = vrcp.f32 %v1325_v44  ;;  %v2598_v46 = vpop.eup %2597 }
 0xeac   :  { %2603 = vrcp.f32 %v1322_v43  ;;  %v2600_v48 = vpop.eup %2599  ;;  %v1202_v49 = vmul.f32 %v2598_v46, %v2584_v16 }
 0xead   :  { %v1201_v51 = vmul.f32 %v2600_v48, %v2582_v12 }
 0xeae   :  { %v1457_v45 = vpop.xlane.xlu0 %1456 }
 0xeaf   :  { %v1203_v53 = vpack.c.bf16 %v1202_v49, %v1201_v51 }
 0xeb0   :  { %v1460_v50 = vpop.xlane.xlu1 %1459 }
 0xeb1   :  { %2605 = vrcp.f32 %v1460_v50 }
 0xeb2   :  { %2607 = vrcp.f32 %v1457_v45 }
 0xeb4   :  { %v1332_v55 = vpop.permute.xlu1 %1331 }
 0xeb5   :  { %v2602_v8 = vpop.eup %2601 }
 0xeb6   :  { %v1592_v47 = vpop.xlane.xlu0 %1591  ;;  %v2604_v56 = vpop.eup %2603  ;;  %v1329_v57 = vmul.f32 %v2602_v8, %v2588_v26 }
 0xeb7   :  { %v1328_v59 = vmul.f32 %v2604_v56, %v2586_v23  ;;  %2609 = vrcp.f32 %v1592_v47 }
 0xeb8   :  { %v1467_v0 = vpop.permute.xlu1 %1466 }
 0xeb9   :  { %v1330_v60 = vpack.c.bf16 %v1329_v57, %v1328_v59 }
 0xeba   :  { %v1205_v52 = vpop.permute.xlu0 %1204 }
 0xebb   :  { %2408 = vmatpush3.bf16.msra.mxu1 %v1205_v52  ;;  %v2606_v61 = vpop.eup %2605 }
 0xebc   :  { %2419 = vmatprep.subr.bf16.mxu1 %v2627_v15  ;;  %v2608_v1 = vpop.eup %2607  ;;  %v1464_v2 = vmul.f32 %v2606_v61, %v2592_v33 }
 0xebd   :  { %v1463_v3 = vmul.f32 %v2608_v1, %v2590_v29 }
 0xebe   :  { %2410 = vmatmul.mubr.msk.bf16.vlgmr.msra.gmra.mrb[24].mxu1 %vm242_vm3, %v1203_v53 }
 0xebf   :  { %2420 = vmatpush3.bf16.msra.mxu1 %v1332_v55  ;;  %2421 = vmatprep.mubr.msk.bf16.mxu1 %vm2628_vm1, %v2627_v15  ;;  %v1465_v4 = vpack.c.bf16 %v1464_v2, %v1463_v3 }
 0xec0   :  { %2431 = vmatprep.subr.bf16.mxu1 %v2627_v15 }
 0xec1   :  { %v2610_v7 = vpop.eup %2609 }
 0xec2   :  { %v1598_v10 = vmul.f32 %v2610_v7, %v3050_v31  ;;  %v2205_v7 = vld [vmem:[%s3200_s8 + $0x1] ss:$0 sm:$0xff] }
 0xec6   :  { %2422 = vmatmul.mubr.msk.bf16.vlgmr.msra.gmra.mrb[28].mxu1 %vm242_vm3, %v1330_v60  ;;  %v2524_v60 = vld [vmem:[%s3199_s10 + $0x18] sm:$0xff]  }
 0xec7   :  { %2432 = vmatpush3.bf16.msra.mxu1 %v1467_v0  ;;  %2433 = vmatprep.mubr.msk.bf16.mxu1 %vm2628_vm1, %v2627_v15 }
 0xec8   :  { %2443 = vmatprep.subr.bf16.mxu1 %v2627_v15 }
 0xece   :  { %2434 = vmatmul.mubr.msk.bf16.vlgmr.msra.gmra.mrb[32].mxu1 %vm242_vm3, %v1465_v4 }
 0xecf   :  { %2445 = vmatprep.mubr.msk.bf16.mxu1 %vm2628_vm1, %v2627_v15 }
 0xee9   :  { %v1595_v5 = vpop.xlane.xlu1 %1594 }
 0xeea   :  { %2611 = vrcp.f32 %v1595_v5 }
 0xeed   :  { %v1602_v6 = vpop.permute.xlu1 %1601 }
 0xeee   :  { %2444 = vmatpush3.bf16.msra.mxu1 %v1602_v6 }
 0xeef   :  { %2457 = vmatprep.subr.bf16.mxu1 %v2627_v15 }
 0xef4   :  { %v2612_v9 = vpop.eup %2611 }
 0xef5   :  { %v1599_v54 = vmul.f32 %v2612_v9, %v2596_v38  ;;  %v2199_v38 = vld [vmem:[%s3198_s7 + $0x1] ss:$0 sm:$0xff] }
 0xef7   :  { %v1600_v11 = vpack.c.bf16 %v1599_v54, %v1598_v10 }
 0xef9   :  { %2446 = vmatmul.mubr.msk.bf16.vlgmr.msra.gmra.mrb[36].mxu1 %vm242_vm3, %v1600_v11  ;;  %v2206_v11 = vld [vmem:[%s3201_s9 + $0x1] ss:$0 sm:$0xff] }
 0xefa   :  { %2461 = vmatprep.mubr.msk.bf16.mxu1 %vm2628_vm1, %v2627_v15 }
 0xf91   :  { %v1244_v12 = vpop.f32.mrb[24].mxu1 }
 0xf92   :  { %1251 = vst.msk [vmem:[#allocation2] sm:$0xff] %vm190_vm2, %v1244_v12  ;;  %v2411_v58 = vpop.f32.mrb[25].mxu1 }
 0xf93   :  { %v1247_v13 = vpop.f32.mrb[26].mxu1 }
 0xf94   :  { %1252 = vst.msk [vmem:[#allocation2 + $0x8] sm:$0xff] %vm190_vm2, %v1247_v13  ;;  %v2412_v14 = vpop.f32.mrb[27].mxu1 }
 0xf99   :  { %v1371_v16 = vpop.f32.mrb[28].mxu1 }
 0xf9a   :  { %1380 = vrot.lane.b32.xlu0 %v1371_v16, %s3241_s28  ;;  %v2423_v17 = vpop.f32.mrb[29].mxu1  ;;  %v2525_v16 = vld [vmem:[%s3202_s12 + $0x20] sm:$0xff]  }
 0xf9b   :  { %v1374_v18 = vpop.f32.mrb[30].mxu1  ;;  %v2526_v17 = vld [vmem:[%s3202_s12 + $0x28] sm:$0xff]  }
 0xf9c   :  { %1382 = vrot.lane.b32.xlu1 %v1374_v18, %s3241_s28  ;;  %v2424_v19 = vpop.f32.mrb[31].mxu1  ;;  %v2527_v18 = vld [vmem:[%s3202_s12 + $0x30] sm:$0xff]  }
 0xf9d   :  { %v2528_v19 = vld [vmem:[%s3202_s12 + $0x38] sm:$0xff]  }
 0xfa1   :  { %v1506_v20 = vpop.f32.mrb[32].mxu1 }
 0xfa2   :  { %1515 = vrot.lane.b32.xlu0 %v1506_v20, %s3242_s29  ;;  %v2435_v21 = vpop.f32.mrb[33].mxu1  ;;  %v2212_v20 = vld [vmem:[%s3203_s11 + $0x1] ss:$0 sm:$0xff] }
 0xfa3   :  { %v1509_v22 = vpop.f32.mrb[34].mxu1 }
 0xfa4   :  { %1517 = vrot.lane.b32.xlu1 %v1509_v22, %s3242_s29  ;;  %v2436_v23 = vpop.f32.mrb[35].mxu1 }
 0xfcc   :  { %v1641_v25 = vpop.f32.mrb[36].mxu1 }
 0xfcd   :  { %1650 = vrot.lane.b32.xlu0 %v1641_v25, %s3243_s0  ;;  %v2447_v26 = vpop.f32.mrb[37].mxu1 }
 0xfce   :  { %v1644_v27 = vpop.f32.mrb[38].mxu1 }
 0xfcf   :  { %1652 = vrot.lane.b32.xlu1 %v1644_v27, %s3243_s0  ;;  %v2448_v28 = vpop.f32.mrb[39].mxu1 }
0x100c   :  { %v1381_v29 = vpop.permute.xlu0 %1380 }
0x100d   :  { %1386 = vst.msk [vmem:[#allocation2] sm:$0xff] %vm448_vm4, %v1381_v29 }
0x100e   :  { %v1383_v30 = vpop.permute.xlu1 %1382 }
0x100f   :  { %1387 = vst.msk [vmem:[#allocation2 + $0x8] sm:$0xff] %vm448_vm4, %v1383_v30 }
0x1014   :  { %v1516_v33 = vpop.permute.xlu0 %1515 }
0x1015   :  { %1521 = vst.msk [vmem:[#allocation2] sm:$0xff] %vm584_vm5, %v1516_v33 }
0x1016   :  { %v1518_v34 = vpop.permute.xlu1 %1517 }
0x1017   :  { %1522 = vst.msk [vmem:[#allocation2 + $0x8] sm:$0xff] %vm584_vm5, %v1518_v34 }
0x103f   :  { %v1651_v31 = vpop.permute.xlu0 %1650 }
0x1040   :  { %1656 = vst.msk [vmem:[#allocation2] sm:$0xff] %vm720_vm6, %v1651_v31 }
0x1041   :  { %v1653_v32 = vpop.permute.xlu1 %1652 }
0x1042   :  { %1657 = vst.msk [vmem:[#allocation2 + $0x8] sm:$0xff] %vm720_vm6, %v1653_v32 }
0x1047   :  { %v1658_v35 = vld [vmem:[#allocation2] sm:$0xff] }
0x1049   :  { %v1659_v36 = vld [vmem:[#allocation2 + $0x8] sm:$0xff] }
0x104a   :  { %v1665_v37 = vpack.c.bf16 %v1659_v36, %v1658_v35 }
0x104c   :  { %2454 = vmatmul.mubr.msk.bf16.vlgmr.msra.gmra.mrb[44].mxu0 %vm72_vm0, %v1665_v37 }
0x104d   :  { %2473 = vmatprep.mubr.msk.bf16.mxu0 %vm2628_vm1, %v2627_v15  ;;  %2466 = vmatpush3.bf16.msra.mxu0 %v2525_v16  ;;  %v2234_v16 = vld [vmem:[%s3206_s15 + $0x1] ss:$0 sm:$0xff] }
0x104e   :  { %2467 = vmatprep.subr.bf16.mxu0 %v2627_v15 }
0x1051   :  { %2468 = vmatpush3.bf16.msra.mxu0 %v2526_v17 }
0x1052   :  { %2469 = vmatprep.subr.bf16.mxu0 %v2627_v15 }
0x1055   :  { %2470 = vmatpush3.bf16.msra.mxu0 %v2527_v18 }
0x1056   :  { %2471 = vmatprep.subr.bf16.mxu0 %v2627_v15 }
0x1059   :  { %2472 = vmatpush3.bf16.msra.mxu0 %v2528_v19 }
0x111f   :  { %v1723_v39 = vpop.f32.mrb[44].mxu0 }
0x1120   :  { %v1724_v40 = vadd.f32 %v2199_v38, %v1723_v39  ;;  %v2455_v42 = vpop.f32.mrb[45].mxu0 }
0x1121   :  { %v1726_v43 = vpop.f32.mrb[46].mxu0 }
0x1122   :  { %v1727_v44 = vadd.f32 %v2199_v38, %v1726_v43  ;;  %v2456_v45 = vpop.f32.mrb[47].mxu0  ;;  %v1730_v46 = vadd.f32 %v1724_v40, %v2979_v62 }
0x1124   :  { %v1736_v47 = vsel %vm72_vm0, %v1730_v46, 0.0  ;;  %v1731_v48 = vadd.f32 %v1727_v44, %v2981_v63  ;;  %v2523_v63 = vld [vmem:[%s3199_s10 + $0x10] sm:$0xff]  }
0x1125   :  { %1737 = vadd.xlane.f32.xlu0 %v1736_v47  ;;  %2458 = vmatpush3.bf16.msra.mxu1 %v2523_v63 }
0x1126   :  { %v1739_v49 = vsel %vm72_vm0, %v1731_v48, 0.0  ;;  %2459 = vmatprep.subr.bf16.mxu1 %v2627_v15 }
0x1127   :  { %1740 = vadd.xlane.f32.xlu1 %v1739_v49 }
0x1129   :  { %2460 = vmatpush3.bf16.msra.mxu1 %v2524_v60 }
0x112a   :  { %2477 = vmatprep.subr.bf16.mxu1 %v2627_v15 }
0x11b2   :  { %v1738_v50 = vpop.xlane.xlu0 %1737 }
0x11b3   :  { %v1742_v51 = vmul.f32 0.03125, %v1738_v50 }
0x11b4   :  { %v1741_v52 = vpop.xlane.xlu1 %1740 }
0x11b5   :  { %v1744_v53 = vsub.f32 %v1730_v46, %v1742_v51  ;;  %v1743_v8 = vmul.f32 0.03125, %v1741_v52  ;;  %v2225_v46 = vld [vmem:[%s3204_s13 + $0x1] ss:$0 sm:$0xff] }
0x11b7   :  { %v1745_v55 = vsub.f32 %v1731_v48, %v1743_v8  ;;  %v1746_v56 = vmul.f32 %v1744_v53, %v1744_v53 }
0x11b9   :  { %v1748_v57 = vsel %vm72_vm0, %v1746_v56, 0.0  ;;  %v1747_v59 = vmul.f32 %v1745_v55, %v1745_v55 }
0x11ba   :  { %1749 = vadd.xlane.f32.xlu0 %v1748_v57 }
0x11bb   :  { %v1751_v62 = vsel %vm72_vm0, %v1747_v59, 0.0 }
0x11be   :  { %1752 = vadd.xlane.f32.xlu0 %v1751_v62 }
0x1247   :  { %v1750_v61 = vpop.xlane.xlu0 %1749 }
0x1248   :  { %v1754_v0 = vmul.f32 0.03125, %v1750_v61 }
0x124a   :  { %v1756_v1 = vadd.f32 1e-12, %v1754_v0 }
0x124b   :  { %v1753_v2 = vpop.xlane.xlu0 %1752 }
0x124c   :  { %2613 = vrsqrt.f32 %v1756_v1  ;;  %v1755_v3 = vmul.f32 0.03125, %v1753_v2 }
0x124e   :  { %v1757_v4 = vadd.f32 1e-12, %v1755_v3 }
0x1250   :  { %2615 = vrsqrt.f32 %v1757_v4  ;;  %v2529_v4 = vld [vmem:[%s3207_s16] sm:$0xff]  }
0x1256   :  { %v2614_v5 = vpop.eup %2613 }
0x1257   :  { %v1760_v6 = vmul.f32 %v2614_v5, %v1744_v53  ;;  %v2530_v5 = vld [vmem:[%s3207_s16 + $0x8] sm:$0xff]  }
0x1259   :  { %v1768_v10 = vmul.f32 %v2205_v7, %v1760_v6 }
0x125a   :  { %v2616_v9 = vpop.eup %2615 }
0x125b   :  { %v1761_v54 = vmul.f32 %v2616_v9, %v1745_v55  ;;  %v1776_v58 = vadd.f32 %v2206_v11, %v1768_v10 }
0x125d   :  { %v1769_v12 = vmul.f32 %v2205_v7, %v1761_v54 }
0x125f   :  { %v1777_v13 = vadd.f32 %v2206_v11, %v1769_v12 }
0x1261   :  { %v1783_v14 = vpack.c.bf16 %v1777_v13, %v1776_v58 }
0x1263   :  { %2462 = vmatmul.mubr.msk.bf16.vlgmr.msra.gmra.mrb[40].mxu1 %vm72_vm0, %v1783_v14 }
0x1264   :  { %2481 = vmatprep.mubr.msk.bf16.mxu1 %vm2628_vm1, %v2627_v15  ;;  %2478 = vmatpush3.bf16.msra.mxu1 %v2529_v4 }
0x1265   :  { %2479 = vmatprep.subr.bf16.mxu1 %v2627_v15 }
0x1268   :  { %2480 = vmatpush3.bf16.msra.mxu1 %v2530_v5 }
0x1269   :  { %2485 = vmatprep.subr.bf16.mxu1 %v2627_v15 }
0x1336   :  { %v1841_v21 = vpop.f32.mrb[40].mxu1 }
0x1337   :  { %v1842_v22 = vadd.f32 %v2212_v20, %v1841_v21  ;;  %v2463_v23 = vpop.f32.mrb[41].mxu1 }
0x1338   :  { %v1844_v24 = vpop.f32.mrb[42].mxu1 }
0x1339   :  { %v1850_v41 = vmul.f32 0.044715, %v1842_v22  ;;  %v1845_v25 = vadd.f32 %v2212_v20, %v1844_v24  ;;  %v2464_v26 = vpop.f32.mrb[43].mxu1  ;;  %v1848_v39 = vmul.f32 0.5, %v1842_v22  ;;  %v2531_v24 = vld [vmem:[%s3208_s18] sm:$0xff]  }
0x133a   :  { %v2235_v26 = vld [vmem:[%s3210_s17] ss:$0 sm:$0xff] }
0x133b   :  { %v1852_v27 = vmul.f32 %v1850_v41, %v1842_v22  ;;  %v1851_v28 = vmul.f32 0.044715, %v1845_v25  ;;  %v1849_v40 = vmul.f32 0.5, %v1845_v25  ;;  %v2532_v41 = vld [vmem:[%s3208_s18 + $0x8] sm:$0xff]  }
0x133d   :  { %v1854_v29 = vmul.f32 %v1852_v27, %v1842_v22  ;;  %v1853_v30 = vmul.f32 %v1851_v28, %v1845_v25 }
0x133f   :  { %v1856_v33 = vadd.f32 %v1854_v29, %v1842_v22  ;;  %v1855_v34 = vmul.f32 %v1853_v30, %v1845_v25 }
0x1341   :  { %v1858_v31 = vmul.f32 0.7978846, %v1856_v33  ;;  %v1857_v32 = vadd.f32 %v1855_v34, %v1845_v25  ;;  %v25_v25 = vstv %s3209_s19 }
0x1342   :  { %26 = vst [vmem:[#allocation4] sm:$0x1] %v25_v25 }
0x1343   :  { %2617 = vtanh.f32 %v1858_v31  ;;  %v1859_v35 = vmul.f32 0.7978846, %v1857_v32 }
0x1345   :  { %2619 = vtanh.f32 %v1859_v35 }
0x1349   :  { %v2239_v31 = vld [vmem:[#allocation4] ss:$0 sm:$0xff] }
0x134d   :  { %v2618_v36 = vpop.eup %2617 }
0x134e   :  { %v1862_v37 = vadd.f32 1.0, %v2618_v36 }
0x134f   :  { %v2620_v38 = vpop.eup %2619 }
0x1350   :  { %v1863_v42 = vadd.f32 1.0, %v2620_v38  ;;  %v1864_v43 = vmul.f32 %v1862_v37, %v1848_v39 }
0x1352   :  { %v1865_v44 = vmul.f32 %v1863_v42, %v1849_v40 }
0x1354   :  { %v1875_v45 = vpack.c.bf16 %v1865_v44, %v1864_v43 }
0x1356   :  { %2474 = vmatmul.mubr.msk.bf16.vlgmr.msra.gmra.mrb[48].mxu0 %vm965_vm7, %v1875_v45 }
0x1429   :  { %v1945_v47 = vpop.f32.mrb[48].mxu0 }
0x142a   :  { %v1946_v48 = vadd.f32 %v2225_v46, %v1945_v47  ;;  %v2475_v49 = vpop.f32.mrb[49].mxu0 }
0x142b   :  { %v1948_v50 = vpop.f32.mrb[50].mxu0 }
0x142c   :  { %v1949_v51 = vadd.f32 %v2225_v46, %v1948_v50  ;;  %v2476_v52 = vpop.f32.mrb[51].mxu0  ;;  %v1952_v53 = vadd.f32 %v1946_v48, %v1776_v58  ;;  %v2233_v58 = vld [vmem:[%s3205_s14 + $0x1] ss:$0 sm:$0xff] }
0x142e   :  { %v1958_v8 = vsel %vm72_vm0, %v1952_v53, 0.0  ;;  %v1953_v55 = vadd.f32 %v1949_v51, %v1777_v13 }
0x142f   :  { %1959 = vadd.xlane.f32.xlu0 %v1958_v8 }
0x1430   :  { %v1961_v56 = vsel %vm72_vm0, %v1953_v55, 0.0 }
0x1431   :  { %1962 = vadd.xlane.f32.xlu1 %v1961_v56 }
0x14bc   :  { %v1960_v57 = vpop.xlane.xlu0 %1959 }
0x14bd   :  { %v1964_v59 = vmul.f32 0.03125, %v1960_v57 }
0x14be   :  { %v1963_v62 = vpop.xlane.xlu1 %1962 }
0x14bf   :  { %v1966_v63 = vsub.f32 %v1952_v53, %v1964_v59  ;;  %v1965_v60 = vmul.f32 0.03125, %v1963_v62 }
0x14c1   :  { %v1967_v61 = vsub.f32 %v1953_v55, %v1965_v60  ;;  %v1968_v0 = vmul.f32 %v1966_v63, %v1966_v63 }
0x14c3   :  { %v1970_v1 = vsel %vm72_vm0, %v1968_v0, 0.0  ;;  %v1969_v2 = vmul.f32 %v1967_v61, %v1967_v61 }
0x14c4   :  { %1971 = vadd.xlane.f32.xlu0 %v1970_v1 }
0x14c5   :  { %v1973_v3 = vsel %vm72_vm0, %v1969_v2, 0.0 }
0x14c6   :  { %1974 = vadd.xlane.f32.xlu1 %v1973_v3 }
0x1551   :  { %v1972_v6 = vpop.xlane.xlu0 %1971 }
0x1552   :  { %v1976_v7 = vmul.f32 0.03125, %v1972_v6 }
0x1553   :  { %v1975_v9 = vpop.xlane.xlu1 %1974 }
0x1554   :  { %v1978_v10 = vadd.f32 1e-12, %v1976_v7  ;;  %v1977_v54 = vmul.f32 0.03125, %v1975_v9 }
0x1556   :  { %2621 = vrsqrt.f32 %v1978_v10  ;;  %v1979_v11 = vadd.f32 1e-12, %v1977_v54 }
0x1558   :  { %2623 = vrsqrt.f32 %v1979_v11 }
0x1560   :  { %v2622_v12 = vpop.eup %2621 }
0x1561   :  { %v1982_v13 = vmul.f32 %v2622_v12, %v1966_v63 }
0x1562   :  { %v2624_v14 = vpop.eup %2623 }
0x1563   :  { %v1990_v17 = vmul.f32 %v2233_v58, %v1982_v13  ;;  %v1983_v18 = vmul.f32 %v2624_v14, %v1967_v61 }
0x1565   :  { %v1998_v19 = vadd.f32 %v2234_v16, %v1990_v17  ;;  %v1991_v20 = vmul.f32 %v2233_v58, %v1983_v18 }
0x1567   :  { %2001 = vst.msk [vmem:[#allocation3] sm:$0x1] %vm2000_vm8, %v1998_v19  ;;  %v1999_v21 = vadd.f32 %v2234_v16, %v1991_v20 }
0x1569   :  { %2002 = vst.msk [vmem:[#allocation3 + $0x1] sm:$0x1] %vm2000_vm8, %v1999_v21 }
0x1570   :  { %v2003_v22 = vld [vmem:[#allocation3] sm:$0x3] }
0x1571   :  { %v2008_v23 = vpack.c.bf16 %v2003_v22, %v2003_v22 }
0x1573   :  { %2482 = vmatmul.mubr.msk.bf16.vlgmr.msra.gmra.mrb[44].mxu1 %vm72_vm0, %v2008_v23 }
0x1574   :  { %2489 = vmatprep.mubr.msk.bf16.mxu1 %vm2628_vm1, %v2627_v15  ;;  %2486 = vmatpush3.bf16.msra.mxu1 %v2531_v24 }
0x1575   :  { %2487 = vmatprep.subr.bf16.mxu1 %v2627_v15 }
0x1578   :  { %2488 = vmatpush3.bf16.msra.mxu1 %v2532_v41 }
0x1646   :  { %v2065_v27 = vpop.f32.mrb[44].mxu1 }
0x1647   :  { %v2066_v28 = vadd.f32 %v2235_v26, %v2065_v27  ;;  %v2483_v29 = vpop.f32.mrb[45].mxu1 }
0x1648   :  { %v2068_v30 = vpop.f32.mrb[46].mxu1 }
0x1649   :  { %2625 = vtanh.f32 %v2066_v28  ;;  %v2484_v15 = vpop.f32.mrb[47].mxu1 }
0x1653   :  { %v2626_v33 = vpop.eup %2625 }
0x1654   :  { %v2076_v34 = vpack.c.bf16 %v2626_v33, %v2626_v33 }
0x1656   :  { %2490 = vmatmul.mubr.msk.bf16.vlgmr.msra.gmra.mrb[48].mxu1 %vm72_vm0, %v2076_v34 }
0x1729   :  { %v2133_v32 = vpop.f32.mrb[48].mxu1 }
0x172a   :  { %v2134_v35 = vadd.f32 %v2239_v31, %v2133_v32  ;;  %v2491_v36 = vpop.f32.mrb[49].mxu1 }
0x172b   :  { %v2136_v37 = vpop.f32.mrb[50].mxu1 }
0x172c   :  { %2140 = vst.msk [vmem:[%s3211_s20] sm:$0x3] %vm2139_vm9, %v2134_v35  ;;  %v2492_v38 = vpop.f32.mrb[51].mxu1 }

</bundles_post_ra>
